<compile_context>
chip_gen: v7x
topology: tpu7x:2x2x1
jax: 0.10.0
libtpu: 0.0.40
codegen_flags: <defaults>
</compile_context>

<pallas_src>
import jax
import jax.numpy as jnp
import numpy as np
from jax.experimental import pallas as pl
from jax.experimental.pallas import tpu as pltpu

EPS = 1e-5
NEG_SLOPE = 0.01                      # PyTorch LeakyReLU default
DIMS = [1, 16, 64, 128, 256, 784]
FEATS = tuple(DIMS[1:])               # (16, 64, 128, 256, 784) true widths
OUT_PAD = 896                         # 7*128 lane-dense width for layer 5
GB_WIDTHS = (16, 64, 128, 256, OUT_PAD)
# 128-lane-aligned offsets of each layer's gamma/beta inside the packed buffer
GB_OFF = (0, 128, 256, 384, 640)
GB_TOTAL = 1536                       # 640 + 896


def _bn_lrelu(h, gamma, beta):
    """Train-mode BatchNorm1d (biased batch stats) folded into one scale/shift,
    followed by LeakyReLU.  Stats use d = h - h[0] so the two sublane
    reductions have no data dependency on each other while the
    E[d^2]-E[d]^2 form stays numerically well-conditioned."""
    inv_b = 1.0 / h.shape[0]
    h0 = h[0:1, :]                               # an in-batch row as shift
    d = h - h0                                   # (B, N)
    s1 = jnp.sum(d, axis=0, keepdims=True)       # (1, N)  -- independent
    s2 = jnp.sum(d * d, axis=0, keepdims=True)   # (1, N)  -- reductions
    md = s1 * inv_b
    var = jnp.maximum(s2 * inv_b - md * md, 0.0)
    mean = h0 + md
    scale = gamma * jax.lax.rsqrt(var + EPS)     # (1, N)
    shift = beta - mean * scale                  # (1, N)
    hn = h * scale + shift                       # 2 wide VPU ops over (B, N)
    return jnp.maximum(hn, NEG_SLOPE * hn)       # LeakyReLU (0 < slope < 1)


def generator_kernel(x_ref, w1, w2, w3, w4, w5_hbm, gb_ref, out_ref,
                     w5_buf, w5_sem):
    # Kick off the layer-5 weight copy (256x896 f32, the dominant DMA) right
    # away so it overlaps with layers 1-4; wait only just before it is needed.
    w5_copy = pltpu.make_async_copy(w5_hbm, w5_buf, w5_sem)
    w5_copy.start()

    def gamma_beta(i):
        off, n = GB_OFF[i], GB_WIDTHS[i]
        # Static ref slices: only the needed (1, n) rows are loaded.
        return gb_ref[0:1, off:off + n], gb_ref[1:2, off:off + n]

    x = x_ref[...]                               # (B, 1) f32

    # Layer 1: in_features=1 -> broadcast multiply instead of a K=1 matmul.
    # Linear biases are omitted everywhere: they cancel under train-mode BN.
    h = _bn_lrelu(x * w1[...], *gamma_beta(0))
    h = _bn_lrelu(jnp.dot(h, w2[...], preferred_element_type=jnp.float32), *gamma_beta(1))
    h = _bn_lrelu(jnp.dot(h, w3[...], preferred_element_type=jnp.float32), *gamma_beta(2))
    h = _bn_lrelu(jnp.dot(h, w4[...], preferred_element_type=jnp.float32), *gamma_beta(3))

    w5_copy.wait()                               # hidden behind layers 1-4
    h = _bn_lrelu(jnp.dot(h, w5_buf[...], preferred_element_type=jnp.float32), *gamma_beta(4))

    out_ref[...] = h                             # (B, 896) lane-dense store


def init_params(key):
    """nn.Linear-style init; gamma/beta randomized (as after some training) so
    the BN affine path and the packed-buffer indexing are actually exercised."""
    weights, biases, gammas, betas = [], [], [], []
    for i in range(5):
        fan_in, fan_out = DIMS[i], DIMS[i + 1]
        key, kw, kb, kg, kbe = jax.random.split(key, 5)
        bound = 1.0 / np.sqrt(fan_in)
        weights.append(jax.random.uniform(kw, (fan_in, fan_out), jnp.float32, -bound, bound))
        biases.append(jax.random.uniform(kb, (1, fan_out), jnp.float32, -bound, bound))
        gammas.append(jax.random.uniform(kg, (1, fan_out), jnp.float32, 0.8, 1.2))
        betas.append(jax.random.uniform(kbe, (1, fan_out), jnp.float32, -0.2, 0.2))
    return weights, biases, gammas, betas


def pack_gamma_beta(gammas, betas):
    """Pack the ten tiny (1,N) vectors into one (2, 1536) lane-aligned buffer.
    The layer-5 region is 896 lanes wide; the 784..896 pad is zero so the
    padded output columns stay exactly 0 through BN + LeakyReLU."""
    gb = np.zeros((2, GB_TOTAL), np.float32)
    for i, (off, n) in enumerate(zip(GB_OFF, FEATS)):
        gb[0, off:off + n] = np.asarray(gammas[i]).reshape(-1)
        gb[1, off:off + n] = np.asarray(betas[i]).reshape(-1)
    return jnp.asarray(gb)


def pad_w5(w5):
    """Zero-pad the last weight from (256, 784) to (256, 896) = 7*128 lanes."""
    w5p = np.zeros((DIMS[4], OUT_PAD), np.float32)
    w5p[:, :DIMS[5]] = np.asarray(w5)
    return jnp.asarray(w5p)


def intelligence_forward(x, weights_1to4, w5_padded, gb):
    """weights_1to4: [w1 (1,16), w2 (16,64), w3 (64,128), w4 (128,256)];
    w5_padded: (256, 896); gb: packed (2, 1536) gamma/beta."""
    B = x.shape[0]
    vmem = pl.BlockSpec(memory_space=pltpu.MemorySpace.VMEM)
    flat = pl.pallas_call(
        generator_kernel,
        out_shape=jax.ShapeDtypeStruct((B, OUT_PAD), jnp.float32),
        in_specs=[vmem,                                   # x
                  vmem, vmem, vmem, vmem,                 # w1..w4
                  pl.BlockSpec(memory_space=pl.ANY),      # w5 stays in HBM
                  vmem],                                  # packed gamma/beta
        out_specs=vmem,
        scratch_shapes=[pltpu.VMEM((DIMS[4], OUT_PAD), jnp.float32),  # w5 buf
                        pltpu.SemaphoreType.DMA(())],
    )(x, *weights_1to4, w5_padded, gb)
    return flat[:, :DIMS[5]].reshape(-1, 1, 28, 28)       # .view(-1, 1, 28, 28)


def reference_forward(x, weights, biases, gammas, betas):
    """Faithful PyTorch semantics: Linear (with bias) -> train-mode BN -> LeakyReLU."""
    h = x
    for w, b, g, be in zip(weights, biases, gammas, betas):
        h = h @ w + b
        mean = jnp.mean(h, axis=0, keepdims=True)
        var = jnp.mean((h - mean) ** 2, axis=0, keepdims=True)
        h = (h - mean) / jnp.sqrt(var + EPS) * g + be
        h = jnp.where(h >= 0, h, NEG_SLOPE * h)
    return h.reshape(-1, 1, 28, 28)


if __name__ == "__main__":
    key = jax.random.PRNGKey(0)
    k_params, k_x = jax.random.split(key)

    weights, biases, gammas, betas = init_params(k_params)
    gb = pack_gamma_beta(gammas, betas)
    w5_padded = pad_w5(weights[4])

    B = 8                                          # small test batch; the kernel
    x = jax.random.normal(k_x, (B, 1), jnp.float32)  # handles much larger B too

    out = jax.block_until_ready(intelligence_forward(x, weights[:4], w5_padded, gb))
    assert out.shape == (B, 1, 28, 28), out.shape

    ref = jax.block_until_ready(reference_forward(x, weights, biases, gammas, betas))
    # Bias elision / affine folding / shifted one-pass stats / zero-padding are
    # exact in real arithmetic; the 2e-4 margin only covers ulp-level rounding
    # differences that train-mode BN can amplify at tiny batch variances.
    np.testing.assert_allclose(np.asarray(out), np.asarray(ref), rtol=2e-4, atol=2e-4)

    print("KERNEL_OK")
</pallas_src>

<mosaic_0001>
module attributes {stable_mosaic.version = 11 : i64} {
  func.func @generator_kernel(%arg0: memref<8x1xf32, #tpu.memory_space<vmem>>, %arg1: memref<1x16xf32, #tpu.memory_space<vmem>>, %arg2: memref<16x64xf32, #tpu.memory_space<vmem>>, %arg3: memref<64x128xf32, #tpu.memory_space<vmem>>, %arg4: memref<128x256xf32, #tpu.memory_space<vmem>>, %arg5: memref<256x896xf32, #tpu.memory_space<any>>, %arg6: memref<2x1536xf32, #tpu.memory_space<vmem>>, %arg7: memref<8x896xf32, #tpu.memory_space<vmem>>, %arg8: memref<256x896xf32, #tpu.memory_space<vmem>>, %arg9: memref<!tpu.dma_semaphore, #tpu.memory_space<semaphore_mem>>) attributes {dimension_semantics = [], scalar_prefetch = 0 : i64, scratch_operands = 2 : i64, tpu.core_type = #tpu.core_type<tc>} {
    tpu.enqueue_dma source(%arg5 : memref<256x896xf32, #tpu.memory_space<any>>) target(%arg8 : memref<256x896xf32, #tpu.memory_space<vmem>>) target_semaphore(%arg9 : memref<!tpu.dma_semaphore, #tpu.memory_space<semaphore_mem>>)
    %c0 = arith.constant 0 : index
    %c0_0 = arith.constant 0 : index
    %0 = vector.load %arg0[%c0, %c0_0] : memref<8x1xf32, #tpu.memory_space<vmem>>, vector<8x1xf32>
    %c0_1 = arith.constant 0 : index
    %c0_2 = arith.constant 0 : index
    %1 = vector.load %arg1[%c0_1, %c0_2] : memref<1x16xf32, #tpu.memory_space<vmem>>, vector<1x16xf32>
    %2 = vector.broadcast %0 : vector<8x1xf32> to vector<8x16xf32>
    %3 = vector.broadcast %1 : vector<1x16xf32> to vector<8x16xf32>
    %4 = arith.mulf %2, %3 : vector<8x16xf32>
    %c0_3 = arith.constant 0 : index
    %c0_4 = arith.constant 0 : index
    %5 = vector.load %arg6[%c0_3, %c0_4] : memref<2x1536xf32, #tpu.memory_space<vmem>>, vector<1x16xf32>
    %c1 = arith.constant 1 : index
    %c0_5 = arith.constant 0 : index
    %6 = vector.load %arg6[%c1, %c0_5] : memref<2x1536xf32, #tpu.memory_space<vmem>>, vector<1x16xf32>
    %7 = vector.extract_strided_slice %4 {offsets = [0, 0], sizes = [1, 16], strides = [1, 1]} : vector<8x16xf32> to vector<1x16xf32>
    %8 = vector.broadcast %7 : vector<1x16xf32> to vector<8x16xf32>
    %9 = arith.subf %4, %8 : vector<8x16xf32>
    %cst = arith.constant dense<0.000000e+00> : vector<16xf32>
    %10 = vector.multi_reduction <add>, %9, %cst [0] : vector<8x16xf32> to vector<16xf32>
    %11 = vector.shape_cast %10 : vector<16xf32> to vector<1x16xf32>
    %12 = arith.mulf %9, %9 : vector<8x16xf32>
    %cst_6 = arith.constant dense<0.000000e+00> : vector<16xf32>
    %13 = vector.multi_reduction <add>, %12, %cst_6 [0] : vector<8x16xf32> to vector<16xf32>
    %14 = vector.shape_cast %13 : vector<16xf32> to vector<1x16xf32>
    %cst_7 = arith.constant 1.250000e-01 : f32
    %15 = vector.broadcast %cst_7 : f32 to vector<1x16xf32>
    %16 = arith.mulf %11, %15 : vector<1x16xf32>
    %cst_8 = arith.constant 1.250000e-01 : f32
    %17 = vector.broadcast %cst_8 : f32 to vector<1x16xf32>
    %18 = arith.mulf %14, %17 : vector<1x16xf32>
    %19 = arith.mulf %16, %16 : vector<1x16xf32>
    %20 = arith.subf %18, %19 : vector<1x16xf32>
    %cst_9 = arith.constant 0.000000e+00 : f32
    %21 = vector.broadcast %cst_9 : f32 to vector<1x16xf32>
    %22 = arith.maximumf %20, %21 : vector<1x16xf32>
    %23 = arith.addf %7, %16 : vector<1x16xf32>
    %cst_10 = arith.constant 9.99999974E-6 : f32
    %24 = vector.broadcast %cst_10 : f32 to vector<1x16xf32>
    %25 = arith.addf %22, %24 : vector<1x16xf32>
    %26 = math.rsqrt %25 : vector<1x16xf32>
    %27 = arith.mulf %5, %26 : vector<1x16xf32>
    %28 = arith.mulf %23, %27 : vector<1x16xf32>
    %29 = arith.subf %6, %28 : vector<1x16xf32>
    %30 = vector.broadcast %27 : vector<1x16xf32> to vector<8x16xf32>
    %31 = arith.mulf %4, %30 : vector<8x16xf32>
    %32 = vector.broadcast %29 : vector<1x16xf32> to vector<8x16xf32>
    %33 = arith.addf %31, %32 : vector<8x16xf32>
    %cst_11 = arith.constant 0.00999999977 : f32
    %34 = vector.broadcast %cst_11 : f32 to vector<8x16xf32>
    %35 = arith.mulf %34, %33 : vector<8x16xf32>
    %36 = arith.maximumf %33, %35 : vector<8x16xf32>
    %c0_12 = arith.constant 0 : index
    %c0_13 = arith.constant 0 : index
    %37 = vector.load %arg2[%c0_12, %c0_13] : memref<16x64xf32, #tpu.memory_space<vmem>>, vector<16x64xf32>
    %cst_14 = arith.constant dense<0.000000e+00> : vector<8x64xf32>
    %38 = tpu.matmul %36, %37, %cst_14 {dimension_numbers = #tpu.dot_dimension_numbers<[1], [0], [0], [1], [0, 0, 1, 1], [], []>} : vector<8x16xf32>, vector<16x64xf32>, vector<8x64xf32> -> vector<8x64xf32>
    %c0_15 = arith.constant 0 : index
    %c128 = arith.constant 128 : index
    %39 = vector.load %arg6[%c0_15, %c128] : memref<2x1536xf32, #tpu.memory_space<vmem>>, vector<1x64xf32>
    %c1_16 = arith.constant 1 : index
    %c128_17 = arith.constant 128 : index
    %40 = vector.load %arg6[%c1_16, %c128_17] : memref<2x1536xf32, #tpu.memory_space<vmem>>, vector<1x64xf32>
    %41 = vector.extract_strided_slice %38 {offsets = [0, 0], sizes = [1, 64], strides = [1, 1]} : vector<8x64xf32> to vector<1x64xf32>
    %42 = vector.broadcast %41 : vector<1x64xf32> to vector<8x64xf32>
    %43 = arith.subf %38, %42 : vector<8x64xf32>
    %cst_18 = arith.constant dense<0.000000e+00> : vector<64xf32>
    %44 = vector.multi_reduction <add>, %43, %cst_18 [0] : vector<8x64xf32> to vector<64xf32>
    %45 = vector.shape_cast %44 : vector<64xf32> to vector<1x64xf32>
    %46 = arith.mulf %43, %43 : vector<8x64xf32>
    %cst_19 = arith.constant dense<0.000000e+00> : vector<64xf32>
    %47 = vector.multi_reduction <add>, %46, %cst_19 [0] : vector<8x64xf32> to vector<64xf32>
    %48 = vector.shape_cast %47 : vector<64xf32> to vector<1x64xf32>
    %cst_20 = arith.constant 1.250000e-01 : f32
    %49 = vector.broadcast %cst_20 : f32 to vector<1x64xf32>
    %50 = arith.mulf %45, %49 : vector<1x64xf32>
    %cst_21 = arith.constant 1.250000e-01 : f32
    %51 = vector.broadcast %cst_21 : f32 to vector<1x64xf32>
    %52 = arith.mulf %48, %51 : vector<1x64xf32>
    %53 = arith.mulf %50, %50 : vector<1x64xf32>
    %54 = arith.subf %52, %53 : vector<1x64xf32>
    %cst_22 = arith.constant 0.000000e+00 : f32
    %55 = vector.broadcast %cst_22 : f32 to vector<1x64xf32>
    %56 = arith.maximumf %54, %55 : vector<1x64xf32>
    %57 = arith.addf %41, %50 : vector<1x64xf32>
    %cst_23 = arith.constant 9.99999974E-6 : f32
    %58 = vector.broadcast %cst_23 : f32 to vector<1x64xf32>
    %59 = arith.addf %56, %58 : vector<1x64xf32>
    %60 = math.rsqrt %59 : vector<1x64xf32>
    %61 = arith.mulf %39, %60 : vector<1x64xf32>
    %62 = arith.mulf %57, %61 : vector<1x64xf32>
    %63 = arith.subf %40, %62 : vector<1x64xf32>
    %64 = vector.broadcast %61 : vector<1x64xf32> to vector<8x64xf32>
    %65 = arith.mulf %38, %64 : vector<8x64xf32>
    %66 = vector.broadcast %63 : vector<1x64xf32> to vector<8x64xf32>
    %67 = arith.addf %65, %66 : vector<8x64xf32>
    %cst_24 = arith.constant 0.00999999977 : f32
    %68 = vector.broadcast %cst_24 : f32 to vector<8x64xf32>
    %69 = arith.mulf %68, %67 : vector<8x64xf32>
    %70 = arith.maximumf %67, %69 : vector<8x64xf32>
    %c0_25 = arith.constant 0 : index
    %c0_26 = arith.constant 0 : index
    %71 = vector.load %arg3[%c0_25, %c0_26] : memref<64x128xf32, #tpu.memory_space<vmem>>, vector<64x128xf32>
    %cst_27 = arith.constant dense<0.000000e+00> : vector<8x128xf32>
    %72 = tpu.matmul %70, %71, %cst_27 {dimension_numbers = #tpu.dot_dimension_numbers<[1], [0], [0], [1], [0, 0, 1, 1], [], []>} : vector<8x64xf32>, vector<64x128xf32>, vector<8x128xf32> -> vector<8x128xf32>
    %c0_28 = arith.constant 0 : index
    %c256 = arith.constant 256 : index
    %73 = vector.load %arg6[%c0_28, %c256] : memref<2x1536xf32, #tpu.memory_space<vmem>>, vector<1x128xf32>
    %c1_29 = arith.constant 1 : index
    %c256_30 = arith.constant 256 : index
    %74 = vector.load %arg6[%c1_29, %c256_30] : memref<2x1536xf32, #tpu.memory_space<vmem>>, vector<1x128xf32>
    %75 = vector.extract_strided_slice %72 {offsets = [0, 0], sizes = [1, 128], strides = [1, 1]} : vector<8x128xf32> to vector<1x128xf32>
    %76 = vector.broadcast %75 : vector<1x128xf32> to vector<8x128xf32>
    %77 = arith.subf %72, %76 : vector<8x128xf32>
    %cst_31 = arith.constant dense<0.000000e+00> : vector<128xf32>
    %78 = vector.multi_reduction <add>, %77, %cst_31 [0] : vector<8x128xf32> to vector<128xf32>
    %79 = vector.shape_cast %78 : vector<128xf32> to vector<1x128xf32>
    %80 = arith.mulf %77, %77 : vector<8x128xf32>
    %cst_32 = arith.constant dense<0.000000e+00> : vector<128xf32>
    %81 = vector.multi_reduction <add>, %80, %cst_32 [0] : vector<8x128xf32> to vector<128xf32>
    %82 = vector.shape_cast %81 : vector<128xf32> to vector<1x128xf32>
    %cst_33 = arith.constant 1.250000e-01 : f32
    %83 = vector.broadcast %cst_33 : f32 to vector<1x128xf32>
    %84 = arith.mulf %79, %83 : vector<1x128xf32>
    %cst_34 = arith.constant 1.250000e-01 : f32
    %85 = vector.broadcast %cst_34 : f32 to vector<1x128xf32>
    %86 = arith.mulf %82, %85 : vector<1x128xf32>
    %87 = arith.mulf %84, %84 : vector<1x128xf32>
    %88 = arith.subf %86, %87 : vector<1x128xf32>
    %cst_35 = arith.constant 0.000000e+00 : f32
    %89 = vector.broadcast %cst_35 : f32 to vector<1x128xf32>
    %90 = arith.maximumf %88, %89 : vector<1x128xf32>
    %91 = arith.addf %75, %84 : vector<1x128xf32>
    %cst_36 = arith.constant 9.99999974E-6 : f32
    %92 = vector.broadcast %cst_36 : f32 to vector<1x128xf32>
    %93 = arith.addf %90, %92 : vector<1x128xf32>
    %94 = math.rsqrt %93 : vector<1x128xf32>
    %95 = arith.mulf %73, %94 : vector<1x128xf32>
    %96 = arith.mulf %91, %95 : vector<1x128xf32>
    %97 = arith.subf %74, %96 : vector<1x128xf32>
    %98 = vector.broadcast %95 : vector<1x128xf32> to vector<8x128xf32>
    %99 = arith.mulf %72, %98 : vector<8x128xf32>
    %100 = vector.broadcast %97 : vector<1x128xf32> to vector<8x128xf32>
    %101 = arith.addf %99, %100 : vector<8x128xf32>
    %cst_37 = arith.constant 0.00999999977 : f32
    %102 = vector.broadcast %cst_37 : f32 to vector<8x128xf32>
    %103 = arith.mulf %102, %101 : vector<8x128xf32>
    %104 = arith.maximumf %101, %103 : vector<8x128xf32>
    %c0_38 = arith.constant 0 : index
    %c0_39 = arith.constant 0 : index
    %105 = vector.load %arg4[%c0_38, %c0_39] : memref<128x256xf32, #tpu.memory_space<vmem>>, vector<128x256xf32>
    %cst_40 = arith.constant dense<0.000000e+00> : vector<8x256xf32>
    %106 = tpu.matmul %104, %105, %cst_40 {dimension_numbers = #tpu.dot_dimension_numbers<[1], [0], [0], [1], [0, 0, 1, 1], [], []>} : vector<8x128xf32>, vector<128x256xf32>, vector<8x256xf32> -> vector<8x256xf32>
    %c0_41 = arith.constant 0 : index
    %c384 = arith.constant 384 : index
    %107 = vector.load %arg6[%c0_41, %c384] : memref<2x1536xf32, #tpu.memory_space<vmem>>, vector<1x256xf32>
    %c1_42 = arith.constant 1 : index
    %c384_43 = arith.constant 384 : index
    %108 = vector.load %arg6[%c1_42, %c384_43] : memref<2x1536xf32, #tpu.memory_space<vmem>>, vector<1x256xf32>
    %109 = vector.extract_strided_slice %106 {offsets = [0, 0], sizes = [1, 256], strides = [1, 1]} : vector<8x256xf32> to vector<1x256xf32>
    %110 = vector.broadcast %109 : vector<1x256xf32> to vector<8x256xf32>
    %111 = arith.subf %106, %110 : vector<8x256xf32>
    %cst_44 = arith.constant dense<0.000000e+00> : vector<256xf32>
    %112 = vector.multi_reduction <add>, %111, %cst_44 [0] : vector<8x256xf32> to vector<256xf32>
    %113 = vector.shape_cast %112 : vector<256xf32> to vector<1x256xf32>
    %114 = arith.mulf %111, %111 : vector<8x256xf32>
    %cst_45 = arith.constant dense<0.000000e+00> : vector<256xf32>
    %115 = vector.multi_reduction <add>, %114, %cst_45 [0] : vector<8x256xf32> to vector<256xf32>
    %116 = vector.shape_cast %115 : vector<256xf32> to vector<1x256xf32>
    %cst_46 = arith.constant 1.250000e-01 : f32
    %117 = vector.broadcast %cst_46 : f32 to vector<1x256xf32>
    %118 = arith.mulf %113, %117 : vector<1x256xf32>
    %cst_47 = arith.constant 1.250000e-01 : f32
    %119 = vector.broadcast %cst_47 : f32 to vector<1x256xf32>
    %120 = arith.mulf %116, %119 : vector<1x256xf32>
    %121 = arith.mulf %118, %118 : vector<1x256xf32>
    %122 = arith.subf %120, %121 : vector<1x256xf32>
    %cst_48 = arith.constant 0.000000e+00 : f32
    %123 = vector.broadcast %cst_48 : f32 to vector<1x256xf32>
    %124 = arith.maximumf %122, %123 : vector<1x256xf32>
    %125 = arith.addf %109, %118 : vector<1x256xf32>
    %cst_49 = arith.constant 9.99999974E-6 : f32
    %126 = vector.broadcast %cst_49 : f32 to vector<1x256xf32>
    %127 = arith.addf %124, %126 : vector<1x256xf32>
    %128 = math.rsqrt %127 : vector<1x256xf32>
    %129 = arith.mulf %107, %128 : vector<1x256xf32>
    %130 = arith.mulf %125, %129 : vector<1x256xf32>
    %131 = arith.subf %108, %130 : vector<1x256xf32>
    %132 = vector.broadcast %129 : vector<1x256xf32> to vector<8x256xf32>
    %133 = arith.mulf %106, %132 : vector<8x256xf32>
    %134 = vector.broadcast %131 : vector<1x256xf32> to vector<8x256xf32>
    %135 = arith.addf %133, %134 : vector<8x256xf32>
    %cst_50 = arith.constant 0.00999999977 : f32
    %136 = vector.broadcast %cst_50 : f32 to vector<8x256xf32>
    %137 = arith.mulf %136, %135 : vector<8x256xf32>
    %138 = arith.maximumf %135, %137 : vector<8x256xf32>
    tpu.wait_dma2 semaphore(%arg9 : memref<!tpu.dma_semaphore, #tpu.memory_space<semaphore_mem>>) src(%arg5 : memref<256x896xf32, #tpu.memory_space<any>>) dst(%arg8 : memref<256x896xf32, #tpu.memory_space<vmem>>)
    %c0_51 = arith.constant 0 : index
    %c0_52 = arith.constant 0 : index
    %139 = vector.load %arg8[%c0_51, %c0_52] : memref<256x896xf32, #tpu.memory_space<vmem>>, vector<256x896xf32>
    %cst_53 = arith.constant dense<0.000000e+00> : vector<8x896xf32>
    %140 = tpu.matmul %138, %139, %cst_53 {dimension_numbers = #tpu.dot_dimension_numbers<[1], [0], [0], [1], [0, 0, 1, 1], [], []>} : vector<8x256xf32>, vector<256x896xf32>, vector<8x896xf32> -> vector<8x896xf32>
    %c0_54 = arith.constant 0 : index
    %c640 = arith.constant 640 : index
    %141 = vector.load %arg6[%c0_54, %c640] : memref<2x1536xf32, #tpu.memory_space<vmem>>, vector<1x896xf32>
    %c1_55 = arith.constant 1 : index
    %c640_56 = arith.constant 640 : index
    %142 = vector.load %arg6[%c1_55, %c640_56] : memref<2x1536xf32, #tpu.memory_space<vmem>>, vector<1x896xf32>
    %143 = vector.extract_strided_slice %140 {offsets = [0, 0], sizes = [1, 896], strides = [1, 1]} : vector<8x896xf32> to vector<1x896xf32>
    %144 = vector.broadcast %143 : vector<1x896xf32> to vector<8x896xf32>
    %145 = arith.subf %140, %144 : vector<8x896xf32>
    %cst_57 = arith.constant dense<0.000000e+00> : vector<896xf32>
    %146 = vector.multi_reduction <add>, %145, %cst_57 [0] : vector<8x896xf32> to vector<896xf32>
    %147 = vector.shape_cast %146 : vector<896xf32> to vector<1x896xf32>
    %148 = arith.mulf %145, %145 : vector<8x896xf32>
    %cst_58 = arith.constant dense<0.000000e+00> : vector<896xf32>
    %149 = vector.multi_reduction <add>, %148, %cst_58 [0] : vector<8x896xf32> to vector<896xf32>
    %150 = vector.shape_cast %149 : vector<896xf32> to vector<1x896xf32>
    %cst_59 = arith.constant 1.250000e-01 : f32
    %151 = vector.broadcast %cst_59 : f32 to vector<1x896xf32>
    %152 = arith.mulf %147, %151 : vector<1x896xf32>
    %cst_60 = arith.constant 1.250000e-01 : f32
    %153 = vector.broadcast %cst_60 : f32 to vector<1x896xf32>
    %154 = arith.mulf %150, %153 : vector<1x896xf32>
    %155 = arith.mulf %152, %152 : vector<1x896xf32>
    %156 = arith.subf %154, %155 : vector<1x896xf32>
    %cst_61 = arith.constant 0.000000e+00 : f32
    %157 = vector.broadcast %cst_61 : f32 to vector<1x896xf32>
    %158 = arith.maximumf %156, %157 : vector<1x896xf32>
    %159 = arith.addf %143, %152 : vector<1x896xf32>
    %cst_62 = arith.constant 9.99999974E-6 : f32
    %160 = vector.broadcast %cst_62 : f32 to vector<1x896xf32>
    %161 = arith.addf %158, %160 : vector<1x896xf32>
    %162 = math.rsqrt %161 : vector<1x896xf32>
    %163 = arith.mulf %141, %162 : vector<1x896xf32>
    %164 = arith.mulf %159, %163 : vector<1x896xf32>
    %165 = arith.subf %142, %164 : vector<1x896xf32>
    %166 = vector.broadcast %163 : vector<1x896xf32> to vector<8x896xf32>
    %167 = arith.mulf %140, %166 : vector<8x896xf32>
    %168 = vector.broadcast %165 : vector<1x896xf32> to vector<8x896xf32>
    %169 = arith.addf %167, %168 : vector<8x896xf32>
    %cst_63 = arith.constant 0.00999999977 : f32
    %170 = vector.broadcast %cst_63 : f32 to vector<8x896xf32>
    %171 = arith.mulf %170, %169 : vector<8x896xf32>
    %172 = arith.maximumf %169, %171 : vector<8x896xf32>
    %c0_64 = arith.constant 0 : index
    %c0_65 = arith.constant 0 : index
    %173 = vector.load %arg7[%c0_64, %c0_65] : memref<8x896xf32, #tpu.memory_space<vmem>>, vector<8x896xf32>
    tpu.vector_store %arg7[%c0_64, %c0_65], %172 {strides = array<i32>} : memref<8x896xf32, #tpu.memory_space<vmem>>, vector<8x896xf32>,
    return
  }
}

</mosaic_0001>

<bundles_post_ra>
// kernel: tpu_custom_call.1
= control target key start
LH: loop header
LB: loop body
LE: loop exit
PB: predicated region body
PF: predicated region fallthrough
CT: control target
= control target key end

     0   :  { %12 = vsyncpa [#allocation5], 0  ;;  %s2388_s0 = inlined_call_operand.vmem [shape: f32[8,1], index: 0, kind: input, shape index: {}]   ;;  %s2389_s1 = inlined_call_operand.vmem [shape: f32[1,16], index: 1, kind: input, shape index: {}]   ;;  %s2390_s2 = inlined_call_operand.hbm [shape: f32[16,64], index: 2, kind: input, shape index: {}]   ;;  %s2391_s3 = inlined_call_operand.hbm [shape: f32[64,128], index: 3, kind: input, shape index: {}]   ;;  %s2392_s4 = inlined_call_operand.hbm [shape: f32[128,256], index: 4, kind: input, shape index: {}]   ;;  %s2393_s5 = inlined_call_operand.hbm [shape: f32[256,896], index: 5, kind: input, shape index: {}]   ;;  %s2394_s6 = inlined_call_operand.vmem [shape: f32[2,1536], index: 6, kind: input, shape index: {}]   ;;  %s2395_s7 = inlined_call_operand.hbm [shape: f32[8,896], index: 7, kind: output, shape index: {}]  }
   0x1   :  { %13 = vsyncpa [#allocation8], 0 }
   0x2   :  { %14 = vsyncpa [#allocation6], 0  ;;  %s2067_s24 = smov [#allocation7]   ;;  %s2068_s26 = smov [#allocation4]  }
   0x3   :  { %s36_s25 = sshll.u32 %s2067_s24, 4  ;;  %s24_s27 = sshll.u32 %s2068_s26, 4  ;;  %s37_s25 = int_to_ptr.vmem [resolvable:$true] %s36_s25  ;;  %s2121_s27 = int_to_ptr.vmem [resolvable:$true] %s24_s27 }
   0x4   :  { %s1949_s30 = scalar_lea.hbm %s2391_s3, 1024 }
   0x5   :  { %p1950_p0 = scmp.ne.s32.totalorder %s2391_s3, %s1949_s30  ;;  %p1953_p1 = scmp.lt.u32.totalorder %s1949_s30, %s2391_s3 }
   0x7   :  { %p1955_p2 = pnand %p1953_p1, %p1950_p0 }
   0x9   :  { %1958 = shalt.err (!%p1955_p2)
}
   0xa   :  { %s1959_s12 = scalar_lea.vmem %s37_s25, 1024  ;;  %p1964_p4 = scmp.lt.s32.totalorder %s37_s25, %s37_s25 }
   0xb   :  { %p1960_p3 = scmp.ne.s32.totalorder %s37_s25, %s1959_s12  ;;  %p1965_p5 = scmp.lt.s32.totalorder %s1959_s12, %s1959_s12 }
   0xd   :  { %p1966_p6 = por %p1965_p5, %p1964_p4 }
   0xf   :  { %p1967_p7 = pnand %p1966_p6, %p1960_p3 }
  0x11   :  { %1970 = shalt.err (!%p1967_p7)
}
  0x12   :  { %s2069_s13 = smov 128   ;;  %s2070_s14 = smov 8  }
  0x13   :  { %42 = dma.hbm_to_vmem [thread:$0]  %s2391_s3, 1024, %s37_s25, [#allocation8], %s2069_s13, %s2069_s13, %s2070_s14  }
  0x14   :  { %s1971_s19 = scalar_lea.hbm %s2390_s2, 256 }
  0x15   :  { %p1972_p8 = scmp.ne.s32.totalorder %s2390_s2, %s1971_s19  ;;  %p1975_p9 = scmp.lt.u32.totalorder %s1971_s19, %s2390_s2 }
  0x17   :  { %p1977_p10 = pnand %p1975_p9, %p1972_p8 }
  0x19   :  { %1980 = shalt.err (!%p1977_p10)
}
  0x1a   :  { %s1981_s24 = scalar_lea.vmem %s2121_s27, 256  ;;  %p1986_p12 = scmp.lt.s32.totalorder %s2121_s27, %s2121_s27 }
  0x1b   :  { %p1982_p11 = scmp.ne.s32.totalorder %s2121_s27, %s1981_s24  ;;  %p1987_p13 = scmp.lt.s32.totalorder %s1981_s24, %s1981_s24 }
  0x1d   :  { %p1988_p0 = por %p1987_p13, %p1986_p12 }
  0x1f   :  { %p1989_p1 = pnand %p1988_p0, %p1982_p11 }
  0x21   :  { %1992 = shalt.err (!%p1989_p1)
}
  0x22   :  { %30 = dma.hbm_to_vmem [thread:$0]  %s2390_s2, 256, %s2121_s27, [#allocation5], %s2069_s13, %s2069_s13, %s2070_s14  }
  0x23   :  { %s2071_s26 = smov [#allocation9]   ;;  %s1993_s8 = scalar_lea.hbm %s2392_s4, 4096 }
  0x24   :  { %s48_s28 = sshll.u32 %s2071_s26, 4  ;;  %p1994_p2 = scmp.ne.s32.totalorder %s2392_s4, %s1993_s8  ;;  %s49_s28 = int_to_ptr.vmem [resolvable:$true] %s48_s28 }
  0x25   :  { %p1997_p3 = scmp.lt.u32.totalorder %s1993_s8, %s2392_s4 }
  0x27   :  { %p1999_p4 = pnand %p1997_p3, %p1994_p2 }
  0x29   :  { %2002 = shalt.err (!%p1999_p4)
}
  0x2a   :  { %s2003_s15 = scalar_lea.vmem %s49_s28, 4096  ;;  %p2008_p6 = scmp.lt.s32.totalorder %s49_s28, %s49_s28 }
  0x2b   :  { %p2004_p5 = scmp.ne.s32.totalorder %s49_s28, %s2003_s15  ;;  %p2009_p7 = scmp.lt.s32.totalorder %s2003_s15, %s2003_s15 }
  0x2d   :  { %p2010_p8 = por %p2009_p7, %p2008_p6 }
  0x2f   :  { %p2011_p9 = pnand %p2010_p8, %p2004_p5 }
  0x31   :  { %2014 = shalt.err (!%p2011_p9)
}
  0x32   :  { %s2072_s2 = smov 256   ;;  %s2073_s27 = smov 16  }
  0x33   :  { %54 = dma.hbm_to_vmem [thread:$0]  %s2392_s4, 4096, %s49_s28, [#allocation8], %s2072_s2, %s2072_s2, %s2073_s27  }
  0x34   :  { %2059 = dma.done.wait [#allocation5], 256  }
  0x35   :  { %2060 = vsyncadd [#allocation5], 4294967040 }
  0x36   :  { %2061 = dma.done.wait [#allocation8], 5120  }
  0x37   :  { %2062 = vsyncadd [#allocation8], 4294962176  ;;  %v2074_v0 = vmov 0   ;;  %v77_v1 = vld [vmem:[%s2388_s0] sm:$0xff]  ;;  %v137_v2 = vld [vmem:[#allocation4] sm:$0xff]  ;;  %v2075_v4 = vmov 0.0|0.0   ;;  %v93_v7 = vlaneseq }
  0x38   :  { %1924 = vset.pattern.permute.xlu0 %v2074_v0  ;;  %v138_v3 = vld [vmem:[#allocation4 + $0x8] sm:$0xff]  ;;  %1639 = vmatprep.subr.bf16.mxu0 %v2075_v4  ;;  %vm2076_vm0 = vmmov 0   ;;  %v2077_v6 = vmov 0.0   ;;  %vm98_vm1 = vcmask 130048   ;;  %v258_v49 = vld [vmem:[#allocation7] sm:$0xff]  ;;  %v259_v50 = vld [vmem:[#allocation7 + $0x8] sm:$0xff] }
  0x39   :  { %81 = vperm.xlu0 %1924, %v77_v1   ;;  %v1640_v5 = vpack.c.bf16 %v138_v3, %v137_v2  ;;  %1617 = vmatprep.mubr.msk.f32.mxu0 %vm2076_vm0, %v2077_v6  ;;  %v2169_v8 = vshrl.u32 %v93_v7, 7  ;;  %v1558_v9 = vld [vmem:[%s2389_s1] ss:$0 sm:$0xff]  ;;  %v92_v40 = vld [vmem:[%s2394_s6 + $0x1] sm:$0x1]  ;;  %v260_v51 = vld [vmem:[#allocation7 + $0x10] sm:$0xff]  ;;  %v1643_v52 = vpack.c.bf16 %v259_v50, %v258_v49 }
  0x3a   :  { %1642 = vmatprep.subr.bf16.mxu1 %v2075_v4  ;;  %1636 = vmatprep.mubr.msk.f32.mxu1 %vm2076_vm0, %v2077_v6  ;;  %v91_v36 = vld [vmem:[%s2394_s6] sm:$0x1]  ;;  %v262_v55 = vld [vmem:[#allocation7 + $0x20] sm:$0xff]  ;;  %v263_v56 = vld [vmem:[#allocation7 + $0x28] sm:$0xff]  ;;  %vm219_vm2 = vcmask 523264   ;;  %s2078_s29 = smov [#allocation2]  }
  0x3b   :  { %1641 = vmatpush3.bf16.msra.mxu0 %v1640_v5  ;;  %v2175_v10 = vsub.s32 0, %v2169_v8  ;;  %v261_v53 = vld [vmem:[#allocation7 + $0x18] sm:$0xff]  ;;  %1644 = vmatpush3.bf16.msra.mxu1 %v1643_v52  ;;  %v1649_v57 = vpack.c.bf16 %v263_v56, %v262_v55  ;;  %v264_v58 = vld [vmem:[#allocation7 + $0x30] sm:$0xff]  ;;  %v391_v49 = vld [vmem:[#allocation9 + $0x48] sm:$0xff]  ;;  %s73_s30 = sshll.u32 %s2078_s29, 4  ;;  %s2015_s10 = scalar_lea.hbm %s2393_s5, 28672  ;;  %s74_s30 = int_to_ptr.vmem [resolvable:$true] %s73_s30 }
  0x3c   :  { %v1646_v54 = vpack.c.bf16 %v261_v53, %v260_v51  ;;  %1645 = vmatprep.subr.bf16.mxu1 %v2075_v4  ;;  %v265_v59 = vld [vmem:[#allocation7 + $0x38] sm:$0xff]  ;;  %v390_v52 = vld [vmem:[#allocation9 + $0x40] sm:$0xff]  ;;  %v392_v53 = vld [vmem:[#allocation9 + $0x50] sm:$0xff]  ;;  %p2016_p10 = scmp.ne.s32.totalorder %s2393_s5, %s2015_s10  ;;  %p2019_p11 = scmp.lt.u32.totalorder %s2015_s10, %s2393_s5 }
  0x3d   :  { %v1652_v60 = vpack.c.bf16 %v265_v59, %v264_v58  ;;  %v393_v50 = vld [vmem:[#allocation9 + $0x58] sm:$0xff]  ;;  %v395_v55 = vld [vmem:[#allocation9 + $0x68] sm:$0xff]  ;;  %v394_v58 = vld [vmem:[#allocation9 + $0x60] sm:$0xff] }
  0x3e   :  { %v1662_v51 = vpack.c.bf16 %v393_v50, %v391_v49  ;;  %v397_v56 = vld [vmem:[#allocation9 + $0x78] sm:$0xff]  ;;  %v396_v59 = vld [vmem:[#allocation9 + $0x70] sm:$0xff]  ;;  %p2021_p12 = pnand %p2019_p11, %p2016_p10 }
  0x3f   :  { %1647 = vmatpush3.bf16.msra.mxu1 %v1646_v54  ;;  %v1664_v54 = vpack.c.bf16 %v392_v53, %v390_v52  ;;  %v340_v50 = vld [vmem:[%s2394_s6 + $0x5] sm:$0x1] }
  0x40   :  { %1648 = vmatprep.subr.bf16.mxu1 %v2075_v4 }
  0x43   :  { %1650 = vmatpush3.bf16.msra.mxu1 %v1649_v57  ;;  %v1666_v57 = vpack.c.bf16 %v397_v56, %v395_v55 }
  0x44   :  { %1651 = vmatprep.subr.bf16.mxu1 %v2075_v4 }
  0x47   :  { %1653 = vmatpush3.bf16.msra.mxu1 %v1652_v60  ;;  %v1668_v60 = vpack.c.bf16 %v396_v59, %v394_v58 }
  0xb8   :  { %v82_v11 = vpop.permute.xlu0 %81 }
  0xb9   :  { %v90_v12 = vmul.f32 %v1558_v9, %v82_v11 }
  0xbb   :  { %v96_v13 = vrot.slane %v90_v12, %v2175_v10 }
  0xbd   :  { %v97_v14 = vsub.f32 %v90_v12, %v96_v13 }
  0xbf   :  { %v99_v15 = vsel %vm98_vm1, %v97_v14, 0.0  ;;  %v106_v16 = vmul.f32 %v97_v14, %v97_v14 }
  0xc0   :  { %v100_v17 = vrot.slane %v99_v15, 4 }
  0xc1   :  { %v107_v18 = vsel %vm98_vm1, %v106_v16, 0.0 }
  0xc2   :  { %v101_v19 = vadd.f32 %v100_v17, %v99_v15  ;;  %v108_v20 = vrot.slane %v107_v18, 4 }
  0xc4   :  { %v102_v21 = vrot.slane %v101_v19, 2  ;;  %v109_v22 = vadd.f32 %v108_v20, %v107_v18 }
  0xc6   :  { %v103_v23 = vadd.f32 %v102_v21, %v101_v19  ;;  %v110_v24 = vrot.slane %v109_v22, 2 }
  0xc8   :  { %v104_v25 = vrot.slane %v103_v23, 1  ;;  %v111_v26 = vadd.f32 %v110_v24, %v109_v22  ;;  %v212_v24 = vld [vmem:[%s2394_s6 + $0x2] sm:$0x1] }
  0xca   :  { %v105_v27 = vadd.f32 %v104_v25, %v103_v23  ;;  %v112_v28 = vrot.slane %v111_v26, 1 }
  0xcc   :  { %v113_v29 = vadd.f32 %v112_v28, %v111_v26  ;;  %v114_v30 = vmul.f32 0.125, %v105_v27  ;;  %v213_v28 = vld [vmem:[%s2394_s6 + $0x3] sm:$0x1] }
  0xce   :  { %v115_v31 = vmul.f32 0.125, %v113_v29  ;;  %v116_v32 = vmul.f32 %v114_v30, %v114_v30  ;;  %v119_v38 = vadd.f32 %v114_v30, %v90_v12 }
  0xd0   :  { %v117_v33 = vsub.f32 %v115_v31, %v116_v32 }
  0xd2   :  { %v118_v34 = vmax.f32 %v117_v33, 0.0 }
  0xd4   :  { %v120_v35 = vadd.f32 1e-05, %v118_v34 }
  0xd6   :  { %1925 = vrsqrt.f32 %v120_v35 }
  0xe0   :  { %v1926_v37 = vpop.eup %1925 }
  0xe1   :  { %v122_v39 = vmul.f32 %v1926_v37, %v91_v36  ;;  %v383_v37 = vld [vmem:[#allocation9 + $0x8] sm:$0xff] }
  0xe3   :  { %v123_v41 = vmul.f32 %v122_v39, %v119_v38  ;;  %v128_v42 = vrot.slane %v122_v39, %v2175_v10  ;;  %v385_v38 = vld [vmem:[#allocation9 + $0x18] sm:$0xff] }
  0xe4   :  { %v1654_v39 = vpack.c.bf16 %v385_v38, %v383_v37 }
  0xe5   :  { %v124_v43 = vsub.f32 %v92_v40, %v123_v41  ;;  %v129_v44 = vmul.f32 %v128_v42, %v90_v12  ;;  %v382_v40 = vld [vmem:[#allocation9] sm:$0xff]  ;;  %v384_v41 = vld [vmem:[#allocation9 + $0x10] sm:$0xff] }
  0xe6   :  { %v1656_v42 = vpack.c.bf16 %v384_v41, %v382_v40  ;;  %1655 = vmatprep.subr.bf16.mxu0 %v1654_v39 }
  0xe7   :  { %v133_v45 = vrot.slane %v124_v43, %v2175_v10  ;;  %v387_v43 = vld [vmem:[#allocation9 + $0x28] sm:$0xff] }
  0xe9   :  { %v134_v46 = vadd.f32 %v133_v45, %v129_v44  ;;  %v389_v44 = vld [vmem:[#allocation9 + $0x38] sm:$0xff] }
  0xea   :  { %v1658_v45 = vpack.c.bf16 %v389_v44, %v387_v43 }
  0xeb   :  { %v135_v47 = vmul.f32 0.01, %v134_v46 }
  0xed   :  { %v136_v48 = vmax.f32 %v134_v46, %v135_v47  ;;  %v386_v46 = vld [vmem:[#allocation9 + $0x20] sm:$0xff]  ;;  %v388_v47 = vld [vmem:[#allocation9 + $0x30] sm:$0xff] }
  0xef   :  { %1618 = vmatmul.mubr.msk.f32.vlgmr.msra.gmra.mrb[0].mxu0 %vm98_vm1, %v136_v48  ;;  %v1660_v48 = vpack.c.bf16 %v388_v47, %v386_v46  ;;  %v339_v46 = vld [vmem:[%s2394_s6 + $0x4] sm:$0x1] }
  0xf0   :  { %478 = vmatprep.mubr.f32.mxu0 %v2077_v6  ;;  %1657 = vmatpush1.bf16.msra.mxu0 %v1656_v42 }
  0xf1   :  { %1659 = vmatprep.subr.bf16.mxu0 %v1658_v45 }
  0xf4   :  { %1661 = vmatpush1.bf16.msra.mxu0 %v1660_v48 }
  0xf5   :  { %1663 = vmatprep.subr.bf16.mxu0 %v1662_v51 }
  0xf8   :  { %1665 = vmatpush1.bf16.msra.mxu0 %v1664_v54 }
  0xf9   :  { %1667 = vmatprep.subr.bf16.mxu0 %v1666_v57 }
  0xfc   :  { %1669 = vmatpush1.bf16.msra.mxu0 %v1668_v60 }
 0x1c2   :  { %v208_v61 = vpop.f32.mrb[0].mxu0 }
 0x1c3   :  { %v217_v62 = vrot.slane %v208_v61, %v2175_v10  ;;  %v1619_v63 = vpop.f32.mrb[1].mxu0 }
 0x1c5   :  { %v218_v0 = vsub.f32 %v208_v61, %v217_v62  ;;  %v401_v62 = vld [vmem:[#allocation9 + $0x98] sm:$0xff] }
 0x1c7   :  { %v220_v1 = vsel %vm219_vm2, %v218_v0, 0.0  ;;  %v227_v2 = vmul.f32 %v218_v0, %v218_v0  ;;  %v398_v0 = vld [vmem:[#allocation9 + $0x80] sm:$0xff] }
 0x1c8   :  { %v221_v3 = vrot.slane %v220_v1, 4 }
 0x1c9   :  { %v228_v5 = vsel %vm219_vm2, %v227_v2, 0.0 }
 0x1ca   :  { %v222_v6 = vadd.f32 %v221_v3, %v220_v1  ;;  %v229_v7 = vrot.slane %v228_v5, 4  ;;  %v400_v1 = vld [vmem:[#allocation9 + $0x90] sm:$0xff]  ;;  %v403_v3 = vld [vmem:[#allocation9 + $0xa8] sm:$0xff] }
 0x1cb   :  { %v1672_v2 = vpack.c.bf16 %v400_v1, %v398_v0 }
 0x1cc   :  { %v223_v9 = vrot.slane %v222_v6, 2  ;;  %v230_v11 = vadd.f32 %v229_v7, %v228_v5  ;;  %v405_v5 = vld [vmem:[#allocation9 + $0xb8] sm:$0xff]  ;;  %v402_v7 = vld [vmem:[#allocation9 + $0xa0] sm:$0xff] }
 0x1ce   :  { %v224_v12 = vadd.f32 %v223_v9, %v222_v6  ;;  %v231_v13 = vrot.slane %v230_v11, 2  ;;  %v1674_v6 = vpack.c.bf16 %v405_v5, %v403_v3  ;;  %v404_v9 = vld [vmem:[#allocation9 + $0xb0] sm:$0xff] }
 0x1d0   :  { %v225_v4 = vrot.slane %v224_v12, 1  ;;  %v232_v14 = vadd.f32 %v231_v13, %v230_v11  ;;  %v1676_v11 = vpack.c.bf16 %v404_v9, %v402_v7  ;;  %v409_v13 = vld [vmem:[#allocation9 + $0xd8] sm:$0xff] }
 0x1d2   :  { %v226_v15 = vadd.f32 %v225_v4, %v224_v12  ;;  %v233_v16 = vrot.slane %v232_v14, 1  ;;  %v407_v12 = vld [vmem:[#allocation9 + $0xc8] sm:$0xff] }
 0x1d3   :  { %v1678_v4 = vpack.c.bf16 %v409_v13, %v407_v12 }
 0x1d4   :  { %v234_v17 = vadd.f32 %v233_v16, %v232_v14  ;;  %v235_v18 = vmul.f32 0.125, %v226_v15  ;;  %v406_v14 = vld [vmem:[#allocation9 + $0xc0] sm:$0xff]  ;;  %v408_v15 = vld [vmem:[#allocation9 + $0xd0] sm:$0xff] }
 0x1d5   :  { %v1680_v16 = vpack.c.bf16 %v408_v15, %v406_v14 }
 0x1d6   :  { %v236_v19 = vmul.f32 0.125, %v234_v17  ;;  %v237_v20 = vmul.f32 %v235_v18, %v235_v18  ;;  %v240_v26 = vadd.f32 %v235_v18, %v208_v61  ;;  %v411_v17 = vld [vmem:[#allocation9 + $0xe8] sm:$0xff]  ;;  %v413_v18 = vld [vmem:[#allocation9 + $0xf8] sm:$0xff] }
 0x1d8   :  { %v238_v21 = vsub.f32 %v236_v19, %v237_v20  ;;  %v1682_v19 = vpack.c.bf16 %v413_v18, %v411_v17  ;;  %v410_v20 = vld [vmem:[#allocation9 + $0xe0] sm:$0xff] }
 0x1da   :  { %v239_v22 = vmax.f32 %v238_v21, 0.0  ;;  %v412_v21 = vld [vmem:[#allocation9 + $0xf0] sm:$0xff] }
 0x1dc   :  { %v241_v23 = vadd.f32 1e-05, %v239_v22  ;;  %v1684_v22 = vpack.c.bf16 %v412_v21, %v410_v20 }
 0x1de   :  { %1927 = vrsqrt.f32 %v241_v23 }
 0x1e8   :  { %v1928_v25 = vpop.eup %1927 }
 0x1e9   :  { %v243_v27 = vmul.f32 %v1928_v25, %v212_v24 }
 0x1eb   :  { %v244_v29 = vmul.f32 %v243_v27, %v240_v26  ;;  %v249_v30 = vrot.slane %v243_v27, %v2175_v10 }
 0x1ed   :  { %v245_v31 = vsub.f32 %v213_v28, %v244_v29  ;;  %v250_v32 = vmul.f32 %v249_v30, %v208_v61  ;;  %v399_v61 = vld [vmem:[#allocation9 + $0x88] sm:$0xff] }
 0x1ee   :  { %v1670_v63 = vpack.c.bf16 %v401_v62, %v399_v61 }
 0x1ef   :  { %v254_v33 = vrot.slane %v245_v31, %v2175_v10 }
 0x1f0   :  { %1671 = vmatprep.subr.bf16.mxu0 %v1670_v63 }
 0x1f1   :  { %v255_v34 = vadd.f32 %v254_v33, %v250_v32  ;;  %1673 = vmatpush1.bf16.msra.mxu0 %v1672_v2 }
 0x1f2   :  { %1675 = vmatprep.subr.bf16.mxu0 %v1674_v6 }
 0x1f3   :  { %v256_v35 = vmul.f32 0.01, %v255_v34 }
 0x1f5   :  { %v257_v36 = vmax.f32 %v255_v34, %v256_v35  ;;  %1677 = vmatpush1.bf16.msra.mxu0 %v1676_v11 }
 0x1f6   :  { %1679 = vmatprep.subr.bf16.mxu0 %v1678_v4 }
 0x1f7   :  { %1637 = vmatmul.mubr.msk.f32.vlgmr.msra.gmra.mrb[0].mxu1 %vm219_vm2, %v257_v36 }
 0x1f9   :  { %1681 = vmatpush1.bf16.msra.mxu0 %v1680_v16 }
 0x1fa   :  { %1683 = vmatprep.subr.bf16.mxu0 %v1682_v19 }
 0x1fd   :  { %1685 = vmatpush1.bf16.msra.mxu0 %v1684_v22 }
 0x2ca   :  { %v335_v23 = vpop.f32.mrb[0].mxu1 }
 0x2cb   :  { %v344_v24 = vrot.slane %v335_v23, %v2175_v10  ;;  %v1638_v25 = vpop.f32.mrb[1].mxu1 }
 0x2cd   :  { %v345_v26 = vsub.f32 %v335_v23, %v344_v24 }
 0x2cf   :  { %v346_v27 = vrot.slane %v345_v26, 4  ;;  %v352_v28 = vmul.f32 %v345_v26, %v345_v26 }
 0x2d1   :  { %v347_v29 = vadd.f32 %v346_v27, %v345_v26  ;;  %v353_v30 = vrot.slane %v352_v28, 4 }
 0x2d3   :  { %v348_v31 = vrot.slane %v347_v29, 2  ;;  %v354_v32 = vadd.f32 %v353_v30, %v352_v28 }
 0x2d5   :  { %v349_v33 = vadd.f32 %v348_v31, %v347_v29  ;;  %v355_v34 = vrot.slane %v354_v32, 2 }
 0x2d7   :  { %v350_v35 = vrot.slane %v349_v33, 1  ;;  %v356_v36 = vadd.f32 %v355_v34, %v354_v32 }
 0x2d9   :  { %v351_v37 = vadd.f32 %v350_v35, %v349_v33  ;;  %v357_v38 = vrot.slane %v356_v36, 1 }
 0x2db   :  { %v358_v39 = vadd.f32 %v357_v38, %v356_v36  ;;  %v359_v40 = vmul.f32 0.125, %v351_v37 }
 0x2dd   :  { %v360_v41 = vmul.f32 0.125, %v358_v39  ;;  %v361_v42 = vmul.f32 %v359_v40, %v359_v40  ;;  %v364_v48 = vadd.f32 %v359_v40, %v335_v23 }
 0x2df   :  { %v362_v43 = vsub.f32 %v360_v41, %v361_v42 }
 0x2e1   :  { %v363_v44 = vmax.f32 %v362_v43, 0.0 }
 0x2e3   :  { %v365_v45 = vadd.f32 1e-05, %v363_v44 }
 0x2e5   :  { %1929 = vrsqrt.f32 %v365_v45 }
 0x2ef   :  { %v1930_v47 = vpop.eup %1929 }
 0x2f0   :  { %v367_v49 = vmul.f32 %v1930_v47, %v339_v46 }
 0x2f2   :  { %v368_v51 = vmul.f32 %v367_v49, %v364_v48  ;;  %v373_v52 = vrot.slane %v367_v49, %v2175_v10 }
 0x2f4   :  { %v369_v53 = vsub.f32 %v340_v50, %v368_v51  ;;  %v374_v54 = vmul.f32 %v373_v52, %v335_v23 }
 0x2f6   :  { %v378_v55 = vrot.slane %v369_v53, %v2175_v10 }
 0x2f8   :  { %v379_v56 = vadd.f32 %v378_v55, %v374_v54 }
 0x2fa   :  { %v380_v57 = vmul.f32 0.01, %v379_v56 }
 0x2fc   :  { %v381_v58 = vmax.f32 %v379_v56, %v380_v57 }
 0x2fe   :  { %479 = vmatmul.mubr.f32.vlgmr.msra.gmra.mrb[2].mxu0 %v381_v58 }
 0x2ff   :  { %2024 = shalt.err (!%p2021_p12)  }
 0x300   :  { %s2025_s27 = scalar_lea.vmem %s74_s30, 28672  ;;  %p2030_p0 = scmp.lt.s32.totalorder %s74_s30, %s74_s30 }
 0x301   :  { %p2026_p13 = scmp.ne.s32.totalorder %s74_s30, %s2025_s27  ;;  %p2031_p1 = scmp.lt.s32.totalorder %s2025_s27, %s2025_s27 }
 0x303   :  { %p2032_p2 = por %p2031_p1, %p2030_p0 }
 0x305   :  { %p2033_p3 = pnand %p2032_p2, %p2026_p13 }
 0x307   :  { %2036 = shalt.err (!%p2033_p3)  }
 0x308   :  { %76 = dma.hbm_to_vmem [thread:$0]  %s2393_s5, 28672, %s74_s30, [#allocation3]  ;;  %v2079_v41 = vmov 1966171168   ;;  %v2244_v51 = vsub.s32 1, %v2169_v8 }
 0x309   :  { %v545_v42 = vunpack.c.l.s4 %v2079_v41  ;;  %v1561_v49 = vld [vmem:[%s2394_s6 + $0x6] ss:$2 sm:$0x3] }
 0x30b   :  { %v546_v43 = vunpack.c.0.s8 %v545_v42 }
 0x30d   :  { %v2236_v45 = vsub.s32 %v546_v43, %v2169_v8 }
 0x3d1   :  { %v2225_v59 = vpop.f32.mrb[2].mxu0 }
 0x3d2   :  { %v492_v60 = vrot.slane %v2225_v59, %v2175_v10  ;;  %v2229_v61 = vpop.f32.mrb[3].mxu0 }
 0x3d3   :  { %v496_v62 = vrot.slane %v2229_v61, %v2175_v10 }
 0x3d4   :  { %v497_v63 = vsub.f32 %v2225_v59, %v492_v60 }
 0x3d5   :  { %v498_v0 = vsub.f32 %v2229_v61, %v496_v62 }
 0x3d6   :  { %v499_v1 = vrot.slane %v497_v63, 4  ;;  %v511_v2 = vmul.f32 %v497_v63, %v497_v63 }
 0x3d7   :  { %v505_v3 = vrot.slane %v498_v0, 4  ;;  %v512_v5 = vmul.f32 %v498_v0, %v498_v0 }
 0x3d8   :  { %v500_v6 = vadd.f32 %v499_v1, %v497_v63  ;;  %v513_v7 = vrot.slane %v511_v2, 4  ;;  %v1562_v1 = vld [vmem:[%s2394_s6 + $0x7] ss:$2 sm:$0x3] }
 0x3d9   :  { %v506_v9 = vadd.f32 %v505_v3, %v498_v0  ;;  %v519_v11 = vrot.slane %v512_v5, 4 }
 0x3da   :  { %v501_v12 = vrot.slane %v500_v6, 2  ;;  %v514_v13 = vadd.f32 %v513_v7, %v511_v2 }
 0x3db   :  { %v507_v4 = vrot.slane %v506_v9, 2  ;;  %v520_v14 = vadd.f32 %v519_v11, %v512_v5 }
 0x3dc   :  { %v502_v15 = vadd.f32 %v501_v12, %v500_v6  ;;  %v515_v16 = vrot.slane %v514_v13, 2 }
 0x3dd   :  { %v508_v17 = vadd.f32 %v507_v4, %v506_v9  ;;  %v521_v18 = vrot.slane %v520_v14, 2 }
 0x3de   :  { %v503_v19 = vrot.slane %v502_v15, 1  ;;  %v516_v20 = vadd.f32 %v515_v16, %v514_v13 }
 0x3df   :  { %v509_v21 = vrot.slane %v508_v17, 1  ;;  %v522_v22 = vadd.f32 %v521_v18, %v520_v14 }
 0x3e0   :  { %v504_v23 = vadd.f32 %v503_v19, %v502_v15  ;;  %v517_v24 = vrot.slane %v516_v20, 1 }
 0x3e1   :  { %v510_v25 = vadd.f32 %v509_v21, %v508_v17  ;;  %v523_v26 = vrot.slane %v522_v22, 1 }
 0x3e2   :  { %v518_v27 = vadd.f32 %v517_v24, %v516_v20  ;;  %v525_v28 = vmul.f32 0.125, %v504_v23 }
 0x3e3   :  { %v524_v29 = vadd.f32 %v523_v26, %v522_v22  ;;  %v526_v30 = vmul.f32 0.125, %v510_v25 }
 0x3e4   :  { %v527_v31 = vmul.f32 0.125, %v518_v27  ;;  %v529_v32 = vmul.f32 %v525_v28, %v525_v28  ;;  %v535_v53 = vadd.f32 %v525_v28, %v2225_v59 }
 0x3e5   :  { %v528_v33 = vmul.f32 0.125, %v524_v29  ;;  %v530_v34 = vmul.f32 %v526_v30, %v526_v30  ;;  %v536_v54 = vadd.f32 %v526_v30, %v2229_v61 }
 0x3e6   :  { %v531_v35 = vsub.f32 %v527_v31, %v529_v32 }
 0x3e7   :  { %v532_v36 = vsub.f32 %v528_v33, %v530_v34 }
 0x3e8   :  { %v533_v37 = vmax.f32 %v531_v35, 0.0 }
 0x3e9   :  { %v534_v38 = vmax.f32 %v532_v36, 0.0 }
 0x3ea   :  { %v537_v39 = vadd.f32 1e-05, %v533_v37 }
 0x3eb   :  { %v538_v40 = vadd.f32 1e-05, %v534_v38 }
 0x3ec   :  { %1931 = vrsqrt.f32 %v537_v39 }
 0x3ed   :  { %1933 = vrsqrt.f32 %v538_v40 }
 0x3f6   :  { %v1932_v44 = vpop.eup %1931 }
 0x3f7   :  { %v1934_v46 = vpop.eup %1933 }
 0x3f8   :  { %v543_v47 = vcombine.low %v1932_v44, %v1934_v46 }
 0x3fa   :  { %v550_v48 = vrot.slane %v543_v47, %v2236_v45 }
 0x3fc   :  { %v557_v50 = vrot.slane %v550_v48, %v2236_v45 }
 0x3fe   :  { %v559_v52 = vmul.f32 %v1561_v49, %v557_v50 }
 0x400   :  { %v564_v55 = vrot.slane %v559_v52, %v2175_v10  ;;  %v568_v56 = vrot.slane %v559_v52, %v2244_v51 }
 0x402   :  { %v571_v57 = vmul.f32 %v564_v55, %v535_v53  ;;  %v572_v58 = vmul.f32 %v568_v56, %v536_v54  ;;  %v592_v60 = vmul.f32 %v564_v55, %v2225_v59  ;;  %v593_v62 = vmul.f32 %v568_v56, %v2229_v61 }
 0x404   :  { %v575_v63 = vcombine.low %v571_v57, %v572_v58 }
 0x406   :  { %v582_v0 = vrot.slane %v575_v63, %v2236_v45 }
 0x408   :  { %v589_v2 = vrot.slane %v582_v0, %v2236_v45 }
 0x40a   :  { %v591_v3 = vsub.f32 %v1562_v1, %v589_v2 }
 0x40c   :  { %v598_v5 = vrot.slane %v591_v3, %v2175_v10  ;;  %v602_v6 = vrot.slane %v591_v3, %v2244_v51 }
 0x40e   :  { %v605_v7 = vadd.f32 %v598_v5, %v592_v60  ;;  %v606_v9 = vadd.f32 %v602_v6, %v593_v62 }
 0x410   :  { %v607_v11 = vmul.f32 0.01, %v605_v7  ;;  %v608_v59 = vmul.f32 0.01, %v606_v9 }
 0x412   :  { %v2259_v12 = vmax.f32 %v605_v7, %v607_v11  ;;  %v2261_v61 = vmax.f32 %v606_v9, %v608_v59 }
 0x413   :  { %2063 = dma.done.wait [#allocation3], 28672 }
 0x414   :  { %2064 = vsyncadd [#allocation3], 4294938624  ;;  %903 = vmatprep.mubr.f32.mxu1 %v2261_v61  ;;  %974 = vmatprep.mubr.f32.mxu0 %v2261_v61  ;;  %v616_v13 = vld [vmem:[#allocation2 + $0x8] sm:$0xff]  ;;  %v623_v4 = vld [vmem:[#allocation2 + $0x40] sm:$0xff]  ;;  %s2080_s20 = smov [#allocation10]  }
 0x415   :  { %v618_v14 = vld [vmem:[#allocation2 + $0x18] sm:$0xff]  ;;  %v1686_v15 = vpack.c.bf16 %v623_v4, %v616_v13  ;;  %v625_v16 = vld [vmem:[#allocation2 + $0x50] sm:$0xff]  ;;  %v615_v17 = vld [vmem:[#allocation2] sm:$0xff] }
 0x416   :  { %v622_v18 = vld [vmem:[#allocation2 + $0x38] sm:$0xff]  ;;  %v1750_v19 = vpack.c.bf16 %v625_v16, %v618_v14  ;;  %v617_v21 = vld [vmem:[#allocation2 + $0x10] sm:$0xff]  ;;  %v624_v22 = vld [vmem:[#allocation2 + $0x48] sm:$0xff] }
 0x417   :  { %v1688_v20 = vpack.c.bf16 %v622_v18, %v615_v17  ;;  %v630_v23 = vld [vmem:[#allocation2 + $0x78] sm:$0xff]  ;;  %1687 = vmatprep.subr.bf16.mxu1 %v1686_v15  ;;  %v1752_v24 = vpack.c.bf16 %v624_v22, %v617_v21  ;;  %v637_v25 = vld [vmem:[#allocation2 + $0xb0] sm:$0xff]  ;;  %v632_v26 = vld [vmem:[#allocation2 + $0x88] sm:$0xff] }
 0x418   :  { %v639_v27 = vld [vmem:[#allocation2 + $0xc0] sm:$0xff]  ;;  %1751 = vmatprep.subr.bf16.mxu0 %v1750_v19  ;;  %v1690_v28 = vpack.c.bf16 %v637_v25, %v630_v23  ;;  %v629_v30 = vld [vmem:[#allocation2 + $0x70] sm:$0xff]  ;;  %v636_v31 = vld [vmem:[#allocation2 + $0xa8] sm:$0xff] }
 0x419   :  { %1689 = vmatpush1.bf16.msra.mxu1 %v1688_v20  ;;  %v1754_v29 = vpack.c.bf16 %v639_v27, %v632_v26  ;;  %v631_v32 = vld [vmem:[#allocation2 + $0x80] sm:$0xff]  ;;  %1753 = vmatpush1.bf16.msra.mxu0 %v1752_v24  ;;  %v1692_v33 = vpack.c.bf16 %v636_v31, %v629_v30  ;;  %v638_v34 = vld [vmem:[#allocation2 + $0xb8] sm:$0xff]  ;;  %v644_v35 = vld [vmem:[#allocation2 + $0xe8] sm:$0xff] }
 0x41a   :  { %v651_v36 = vld [vmem:[#allocation2 + $0x120] sm:$0xff]  ;;  %1691 = vmatprep.subr.bf16.mxu1 %v1690_v28  ;;  %v1756_v37 = vpack.c.bf16 %v638_v34, %v631_v32  ;;  %v646_v39 = vld [vmem:[#allocation2 + $0xf8] sm:$0xff]  ;;  %v653_v40 = vld [vmem:[#allocation2 + $0x130] sm:$0xff] }
 0x41b   :  { %1755 = vmatprep.subr.bf16.mxu0 %v1754_v29  ;;  %v1694_v38 = vpack.c.bf16 %v651_v36, %v644_v35  ;;  %v643_v41 = vld [vmem:[#allocation2 + $0xe0] sm:$0xff]  ;;  %v1758_v42 = vpack.c.bf16 %v653_v40, %v646_v39  ;;  %v650_v43 = vld [vmem:[#allocation2 + $0x118] sm:$0xff]  ;;  %v645_v44 = vld [vmem:[#allocation2 + $0xf0] sm:$0xff] }
 0x41c   :  { %v652_v46 = vld [vmem:[#allocation2 + $0x128] sm:$0xff]  ;;  %v1696_v47 = vpack.c.bf16 %v650_v43, %v643_v41  ;;  %v658_v48 = vld [vmem:[#allocation2 + $0x158] sm:$0xff]  ;;  %v665_v49 = vld [vmem:[#allocation2 + $0x190] sm:$0xff] }
 0x41d   :  { %1693 = vmatpush1.bf16.msra.mxu1 %v1692_v33  ;;  %v660_v50 = vld [vmem:[#allocation2 + $0x168] sm:$0xff]  ;;  %1757 = vmatpush1.bf16.msra.mxu0 %v1756_v37  ;;  %v1760_v52 = vpack.c.bf16 %v652_v46, %v645_v44  ;;  %v1698_v53 = vpack.c.bf16 %v665_v49, %v658_v48  ;;  %v667_v54 = vld [vmem:[#allocation2 + $0x1a0] sm:$0xff]  ;;  %v657_v55 = vld [vmem:[#allocation2 + $0x150] sm:$0xff] }
 0x41e   :  { %1695 = vmatprep.subr.bf16.mxu1 %v1694_v38  ;;  %v664_v56 = vld [vmem:[#allocation2 + $0x188] sm:$0xff]  ;;  %1759 = vmatprep.subr.bf16.mxu0 %v1758_v42  ;;  %v1762_v57 = vpack.c.bf16 %v667_v54, %v660_v50  ;;  %v659_v58 = vld [vmem:[#allocation2 + $0x160] sm:$0xff]  ;;  %v666_v60 = vld [vmem:[#allocation2 + $0x198] sm:$0xff] }
 0x41f   :  { %v672_v62 = vld [vmem:[#allocation2 + $0x1c8] sm:$0xff]  ;;  %v679_v63 = vld [vmem:[#allocation2 + $0x200] sm:$0xff]  ;;  %v674_v0 = vld [vmem:[#allocation2 + $0x1d8] sm:$0xff]  ;;  %v1700_v2 = vpack.c.bf16 %v664_v56, %v657_v55  ;;  %v1764_v3 = vpack.c.bf16 %v666_v60, %v659_v58 }
 0x420   :  { %v681_v1 = vld [vmem:[#allocation2 + $0x210] sm:$0xff]  ;;  %v1702_v5 = vpack.c.bf16 %v679_v63, %v672_v62  ;;  %v671_v6 = vld [vmem:[#allocation2 + $0x1c0] sm:$0xff]  ;;  %v678_v7 = vld [vmem:[#allocation2 + $0x1f8] sm:$0xff] }
 0x421   :  { %1697 = vmatpush1.bf16.msra.mxu1 %v1696_v47  ;;  %1761 = vmatpush1.bf16.msra.mxu0 %v1760_v52  ;;  %v673_v9 = vld [vmem:[#allocation2 + $0x1d0] sm:$0xff]  ;;  %v1766_v11 = vpack.c.bf16 %v681_v1, %v674_v0  ;;  %v680_v59 = vld [vmem:[#allocation2 + $0x208] sm:$0xff]  ;;  %v686_v13 = vld [vmem:[#allocation2 + $0x238] sm:$0xff]  ;;  %v1704_v16 = vpack.c.bf16 %v678_v7, %v671_v6 }
 0x422   :  { %1699 = vmatprep.subr.bf16.mxu1 %v1698_v53  ;;  %1763 = vmatprep.subr.bf16.mxu0 %v1762_v57  ;;  %v693_v4 = vld [vmem:[#allocation2 + $0x270] sm:$0xff]  ;;  %v688_v14 = vld [vmem:[#allocation2 + $0x248] sm:$0xff]  ;;  %v695_v15 = vld [vmem:[#allocation2 + $0x280] sm:$0xff]  ;;  %v1768_v17 = vpack.c.bf16 %v680_v59, %v673_v9 }
 0x423   :  { %v1706_v18 = vpack.c.bf16 %v693_v4, %v686_v13  ;;  %v685_v19 = vld [vmem:[#allocation2 + $0x230] sm:$0xff]  ;;  %v692_v20 = vld [vmem:[#allocation2 + $0x268] sm:$0xff]  ;;  %v687_v21 = vld [vmem:[#allocation2 + $0x240] sm:$0xff]  ;;  %v1770_v22 = vpack.c.bf16 %v695_v15, %v688_v14 }
 0x424   :  { %v694_v23 = vld [vmem:[#allocation2 + $0x278] sm:$0xff]  ;;  %v700_v24 = vld [vmem:[#allocation2 + $0x2a8] sm:$0xff]  ;;  %v707_v25 = vld [vmem:[#allocation2 + $0x2e0] sm:$0xff]  ;;  %v1708_v28 = vpack.c.bf16 %v692_v20, %v685_v19 }
 0x425   :  { %1701 = vmatpush1.bf16.msra.mxu1 %v1700_v2  ;;  %1765 = vmatpush1.bf16.msra.mxu0 %v1764_v3  ;;  %v702_v26 = vld [vmem:[#allocation2 + $0x2b8] sm:$0xff]  ;;  %v709_v27 = vld [vmem:[#allocation2 + $0x2f0] sm:$0xff]  ;;  %v1772_v29 = vpack.c.bf16 %v694_v23, %v687_v21  ;;  %v1710_v30 = vpack.c.bf16 %v707_v25, %v700_v24  ;;  %v699_v31 = vld [vmem:[#allocation2 + $0x2a0] sm:$0xff] }
 0x426   :  { %1703 = vmatprep.subr.bf16.mxu1 %v1702_v5  ;;  %1767 = vmatprep.subr.bf16.mxu0 %v1766_v11  ;;  %v706_v32 = vld [vmem:[#allocation2 + $0x2d8] sm:$0xff]  ;;  %v701_v33 = vld [vmem:[#allocation2 + $0x2b0] sm:$0xff]  ;;  %v1774_v34 = vpack.c.bf16 %v709_v27, %v702_v26  ;;  %v708_v35 = vld [vmem:[#allocation2 + $0x2e8] sm:$0xff] }
 0x427   :  { %v714_v36 = vld [vmem:[#allocation2 + $0x318] sm:$0xff]  ;;  %v721_v37 = vld [vmem:[#allocation2 + $0x350] sm:$0xff]  ;;  %v716_v38 = vld [vmem:[#allocation2 + $0x328] sm:$0xff]  ;;  %v1712_v40 = vpack.c.bf16 %v706_v32, %v699_v31  ;;  %v1776_v41 = vpack.c.bf16 %v708_v35, %v701_v33 }
 0x428   :  { %v723_v39 = vld [vmem:[#allocation2 + $0x360] sm:$0xff]  ;;  %v1714_v42 = vpack.c.bf16 %v721_v37, %v714_v36  ;;  %v713_v43 = vld [vmem:[#allocation2 + $0x310] sm:$0xff]  ;;  %v720_v44 = vld [vmem:[#allocation2 + $0x348] sm:$0xff] }
 0x429   :  { %1705 = vmatpush1.bf16.msra.mxu1 %v1704_v16  ;;  %1769 = vmatpush1.bf16.msra.mxu0 %v1768_v17  ;;  %v715_v46 = vld [vmem:[#allocation2 + $0x320] sm:$0xff]  ;;  %v1778_v47 = vpack.c.bf16 %v723_v39, %v716_v38  ;;  %v722_v48 = vld [vmem:[#allocation2 + $0x358] sm:$0xff]  ;;  %v728_v49 = vld [vmem:[#allocation2 + $0x388] sm:$0xff]  ;;  %v1716_v54 = vpack.c.bf16 %v720_v44, %v713_v43 }
 0x42a   :  { %1707 = vmatprep.subr.bf16.mxu1 %v1706_v18  ;;  %1771 = vmatprep.subr.bf16.mxu0 %v1770_v22  ;;  %v735_v50 = vld [vmem:[#allocation2 + $0x3c0] sm:$0xff]  ;;  %v730_v52 = vld [vmem:[#allocation2 + $0x398] sm:$0xff]  ;;  %v737_v53 = vld [vmem:[#allocation2 + $0x3d0] sm:$0xff]  ;;  %v1780_v55 = vpack.c.bf16 %v722_v48, %v715_v46 }
 0x42b   :  { %v1718_v56 = vpack.c.bf16 %v735_v50, %v728_v49  ;;  %v727_v57 = vld [vmem:[#allocation2 + $0x380] sm:$0xff]  ;;  %v734_v58 = vld [vmem:[#allocation2 + $0x3b8] sm:$0xff]  ;;  %v729_v60 = vld [vmem:[#allocation2 + $0x390] sm:$0xff]  ;;  %v1782_v62 = vpack.c.bf16 %v737_v53, %v730_v52 }
 0x42c   :  { %v736_v63 = vld [vmem:[#allocation2 + $0x3c8] sm:$0xff]  ;;  %v742_v0 = vld [vmem:[#allocation2 + $0x3f8] sm:$0xff]  ;;  %v749_v1 = vld [vmem:[#allocation2 + $0x430] sm:$0xff]  ;;  %v1720_v5 = vpack.c.bf16 %v734_v58, %v727_v57 }
 0x42d   :  { %1709 = vmatpush1.bf16.msra.mxu1 %v1708_v28  ;;  %1773 = vmatpush1.bf16.msra.mxu0 %v1772_v29  ;;  %v744_v2 = vld [vmem:[#allocation2 + $0x408] sm:$0xff]  ;;  %v751_v3 = vld [vmem:[#allocation2 + $0x440] sm:$0xff]  ;;  %v1784_v6 = vpack.c.bf16 %v736_v63, %v729_v60  ;;  %v1722_v7 = vpack.c.bf16 %v749_v1, %v742_v0  ;;  %v741_v9 = vld [vmem:[#allocation2 + $0x3f0] sm:$0xff] }
 0x42e   :  { %1711 = vmatprep.subr.bf16.mxu1 %v1710_v30  ;;  %1775 = vmatprep.subr.bf16.mxu0 %v1774_v34  ;;  %v748_v11 = vld [vmem:[#allocation2 + $0x428] sm:$0xff]  ;;  %v743_v59 = vld [vmem:[#allocation2 + $0x400] sm:$0xff]  ;;  %v1786_v13 = vpack.c.bf16 %v751_v3, %v744_v2  ;;  %v750_v4 = vld [vmem:[#allocation2 + $0x438] sm:$0xff] }
 0x42f   :  { %v756_v14 = vld [vmem:[#allocation2 + $0x468] sm:$0xff]  ;;  %v763_v15 = vld [vmem:[#allocation2 + $0x4a0] sm:$0xff]  ;;  %v758_v16 = vld [vmem:[#allocation2 + $0x478] sm:$0xff]  ;;  %v1724_v18 = vpack.c.bf16 %v748_v11, %v741_v9  ;;  %v1788_v19 = vpack.c.bf16 %v750_v4, %v743_v59 }
 0x430   :  { %v765_v17 = vld [vmem:[#allocation2 + $0x4b0] sm:$0xff]  ;;  %v1726_v20 = vpack.c.bf16 %v763_v15, %v756_v14  ;;  %v755_v21 = vld [vmem:[#allocation2 + $0x460] sm:$0xff]  ;;  %v762_v22 = vld [vmem:[#allocation2 + $0x498] sm:$0xff] }
 0x431   :  { %1713 = vmatpush1.bf16.msra.mxu1 %v1712_v40  ;;  %1777 = vmatpush1.bf16.msra.mxu0 %v1776_v41  ;;  %v757_v23 = vld [vmem:[#allocation2 + $0x470] sm:$0xff]  ;;  %v1790_v24 = vpack.c.bf16 %v765_v17, %v758_v16  ;;  %v764_v25 = vld [vmem:[#allocation2 + $0x4a8] sm:$0xff]  ;;  %v770_v26 = vld [vmem:[#allocation2 + $0x4d8] sm:$0xff]  ;;  %v1728_v30 = vpack.c.bf16 %v762_v22, %v755_v21 }
 0x432   :  { %1715 = vmatprep.subr.bf16.mxu1 %v1714_v42  ;;  %1779 = vmatprep.subr.bf16.mxu0 %v1778_v47  ;;  %v777_v27 = vld [vmem:[#allocation2 + $0x510] sm:$0xff]  ;;  %v772_v28 = vld [vmem:[#allocation2 + $0x4e8] sm:$0xff]  ;;  %v779_v29 = vld [vmem:[#allocation2 + $0x520] sm:$0xff]  ;;  %v1792_v31 = vpack.c.bf16 %v764_v25, %v757_v23 }
 0x433   :  { %v1730_v32 = vpack.c.bf16 %v777_v27, %v770_v26  ;;  %v769_v33 = vld [vmem:[#allocation2 + $0x4d0] sm:$0xff]  ;;  %v776_v34 = vld [vmem:[#allocation2 + $0x508] sm:$0xff]  ;;  %v771_v35 = vld [vmem:[#allocation2 + $0x4e0] sm:$0xff]  ;;  %v1794_v36 = vpack.c.bf16 %v779_v29, %v772_v28 }
 0x434   :  { %v778_v37 = vld [vmem:[#allocation2 + $0x518] sm:$0xff]  ;;  %v784_v38 = vld [vmem:[#allocation2 + $0x548] sm:$0xff]  ;;  %v791_v39 = vld [vmem:[#allocation2 + $0x580] sm:$0xff]  ;;  %v1732_v42 = vpack.c.bf16 %v776_v34, %v769_v33 }
 0x435   :  { %1717 = vmatpush1.bf16.msra.mxu1 %v1716_v54  ;;  %1781 = vmatpush1.bf16.msra.mxu0 %v1780_v55  ;;  %v786_v40 = vld [vmem:[#allocation2 + $0x558] sm:$0xff]  ;;  %v793_v41 = vld [vmem:[#allocation2 + $0x590] sm:$0xff]  ;;  %v1796_v43 = vpack.c.bf16 %v778_v37, %v771_v35  ;;  %v1734_v44 = vpack.c.bf16 %v791_v39, %v784_v38  ;;  %v783_v46 = vld [vmem:[#allocation2 + $0x540] sm:$0xff] }
 0x436   :  { %1719 = vmatprep.subr.bf16.mxu1 %v1718_v56  ;;  %1783 = vmatprep.subr.bf16.mxu0 %v1782_v62  ;;  %v790_v47 = vld [vmem:[#allocation2 + $0x578] sm:$0xff]  ;;  %v785_v48 = vld [vmem:[#allocation2 + $0x550] sm:$0xff]  ;;  %v1798_v49 = vpack.c.bf16 %v793_v41, %v786_v40  ;;  %v792_v50 = vld [vmem:[#allocation2 + $0x588] sm:$0xff] }
 0x437   :  { %v798_v52 = vld [vmem:[#allocation2 + $0x5b8] sm:$0xff]  ;;  %v805_v53 = vld [vmem:[#allocation2 + $0x5f0] sm:$0xff]  ;;  %v800_v54 = vld [vmem:[#allocation2 + $0x5c8] sm:$0xff]  ;;  %v1736_v56 = vpack.c.bf16 %v790_v47, %v783_v46  ;;  %v1800_v57 = vpack.c.bf16 %v792_v50, %v785_v48 }
 0x438   :  { %v807_v55 = vld [vmem:[#allocation2 + $0x600] sm:$0xff]  ;;  %v1738_v58 = vpack.c.bf16 %v805_v53, %v798_v52  ;;  %v797_v60 = vld [vmem:[#allocation2 + $0x5b0] sm:$0xff]  ;;  %v804_v62 = vld [vmem:[#allocation2 + $0x5e8] sm:$0xff] }
 0x439   :  { %1721 = vmatpush1.bf16.msra.mxu1 %v1720_v5  ;;  %1785 = vmatpush1.bf16.msra.mxu0 %v1784_v6  ;;  %v799_v63 = vld [vmem:[#allocation2 + $0x5c0] sm:$0xff]  ;;  %v1802_v0 = vpack.c.bf16 %v807_v55, %v800_v54  ;;  %v806_v1 = vld [vmem:[#allocation2 + $0x5f8] sm:$0xff]  ;;  %v812_v2 = vld [vmem:[#allocation2 + $0x628] sm:$0xff] }
 0x43a   :  { %1723 = vmatprep.subr.bf16.mxu1 %v1722_v7  ;;  %1787 = vmatprep.subr.bf16.mxu0 %v1786_v13  ;;  %v819_v3 = vld [vmem:[#allocation2 + $0x660] sm:$0xff]  ;;  %v814_v5 = vld [vmem:[#allocation2 + $0x638] sm:$0xff]  ;;  %v821_v6 = vld [vmem:[#allocation2 + $0x670] sm:$0xff]  ;;  %v1740_v7 = vpack.c.bf16 %v804_v62, %v797_v60  ;;  %v1804_v9 = vpack.c.bf16 %v806_v1, %v799_v63 }
 0x43b   :  { %v1742_v11 = vpack.c.bf16 %v819_v3, %v812_v2  ;;  %v811_v59 = vld [vmem:[#allocation2 + $0x620] sm:$0xff]  ;;  %v818_v13 = vld [vmem:[#allocation2 + $0x658] sm:$0xff]  ;;  %v813_v4 = vld [vmem:[#allocation2 + $0x630] sm:$0xff]  ;;  %v1806_v14 = vpack.c.bf16 %v821_v6, %v814_v5 }
 0x43c   :  { %v820_v15 = vld [vmem:[#allocation2 + $0x668] sm:$0xff]  ;;  %v826_v16 = vld [vmem:[#allocation2 + $0x698] sm:$0xff]  ;;  %v833_v17 = vld [vmem:[#allocation2 + $0x6d0] sm:$0xff] }
 0x43d   :  { %1725 = vmatpush1.bf16.msra.mxu1 %v1724_v18  ;;  %1789 = vmatpush1.bf16.msra.mxu0 %v1788_v19  ;;  %v828_v18 = vld [vmem:[#allocation2 + $0x6a8] sm:$0xff]  ;;  %v835_v19 = vld [vmem:[#allocation2 + $0x6e0] sm:$0xff]  ;;  %v1808_v21 = vpack.c.bf16 %v820_v15, %v813_v4  ;;  %v1746_v22 = vpack.c.bf16 %v833_v17, %v826_v16  ;;  %v825_v23 = vld [vmem:[#allocation2 + $0x690] sm:$0xff] }
 0x43e   :  { %1727 = vmatprep.subr.bf16.mxu1 %v1726_v20  ;;  %1791 = vmatprep.subr.bf16.mxu0 %v1790_v24  ;;  %v1744_v20 = vpack.c.bf16 %v818_v13, %v811_v59  ;;  %v832_v24 = vld [vmem:[#allocation2 + $0x6c8] sm:$0xff]  ;;  %v827_v25 = vld [vmem:[#allocation2 + $0x6a0] sm:$0xff]  ;;  %v1810_v26 = vpack.c.bf16 %v835_v19, %v828_v18  ;;  %v834_v27 = vld [vmem:[#allocation2 + $0x6d8] sm:$0xff] }
 0x43f   :  { %v620_v28 = vld [vmem:[#allocation2 + $0x28] sm:$0xff]  ;;  %v627_v29 = vld [vmem:[#allocation2 + $0x60] sm:$0xff]  ;;  %v1812_v33 = vpack.c.bf16 %v834_v27, %v827_v25  ;;  %v634_v37 = vld [vmem:[#allocation2 + $0x98] sm:$0xff] }
 0x440   :  { %v1814_v34 = vpack.c.bf16 %v627_v29, %v620_v28  ;;  %v619_v35 = vld [vmem:[#allocation2 + $0x20] sm:$0xff]  ;;  %v641_v38 = vld [vmem:[#allocation2 + $0xd0] sm:$0xff]  ;;  %v628_v41 = vld [vmem:[#allocation2 + $0x68] sm:$0xff] }
 0x441   :  { %1729 = vmatpush1.bf16.msra.mxu1 %v1728_v30  ;;  %1793 = vmatpush1.bf16.msra.mxu0 %v1792_v31  ;;  %v733_v30 = vld [vmem:[#allocation2 + $0x3b0] sm:$0xff]  ;;  %v740_v31 = vld [vmem:[#allocation2 + $0x3e8] sm:$0xff]  ;;  %v1818_v46 = vpack.c.bf16 %v641_v38, %v634_v37  ;;  %v655_v52 = vld [vmem:[#allocation2 + $0x140] sm:$0xff] }
 0x442   :  { %1731 = vmatprep.subr.bf16.mxu1 %v1730_v32  ;;  %1795 = vmatprep.subr.bf16.mxu0 %v1794_v36  ;;  %v1748_v32 = vpack.c.bf16 %v832_v24, %v825_v23  ;;  %v626_v36 = vld [vmem:[#allocation2 + $0x58] sm:$0xff]  ;;  %v1878_v39 = vpack.c.bf16 %v740_v31, %v733_v30  ;;  %v621_v40 = vld [vmem:[#allocation2 + $0x30] sm:$0xff]  ;;  %v640_v48 = vld [vmem:[#allocation2 + $0xc8] sm:$0xff] }
 0x443   :  { %v633_v47 = vld [vmem:[#allocation2 + $0x90] sm:$0xff]  ;;  %v1880_v50 = vpack.c.bf16 %v628_v41, %v621_v40  ;;  %v635_v54 = vld [vmem:[#allocation2 + $0xa0] sm:$0xff]  ;;  %v642_v55 = vld [vmem:[#allocation2 + $0xd8] sm:$0xff] }
 0x444   :  { %v647_v62 = vld [vmem:[#allocation2 + $0x100] sm:$0xff]  ;;  %v654_v63 = vld [vmem:[#allocation2 + $0x138] sm:$0xff]  ;;  %v1884_v1 = vpack.c.bf16 %v642_v55, %v635_v54  ;;  %v669_v2 = vld [vmem:[#allocation2 + $0x1b0] sm:$0xff] }
 0x445   :  { %1733 = vmatpush1.bf16.msra.mxu1 %v1732_v42  ;;  %1797 = vmatpush1.bf16.msra.mxu0 %v1796_v43  ;;  %v747_v42 = vld [vmem:[#allocation2 + $0x420] sm:$0xff]  ;;  %v754_v43 = vld [vmem:[#allocation2 + $0x458] sm:$0xff]  ;;  %v649_v5 = vld [vmem:[#allocation2 + $0x110] sm:$0xff] }
 0x446   :  { %1735 = vmatprep.subr.bf16.mxu1 %v1734_v44  ;;  %1799 = vmatprep.subr.bf16.mxu0 %v1798_v49  ;;  %v1816_v44 = vpack.c.bf16 %v626_v36, %v619_v35  ;;  %v648_v49 = vld [vmem:[#allocation2 + $0x108] sm:$0xff]  ;;  %v1882_v53 = vpack.c.bf16 %v754_v43, %v747_v42  ;;  %v661_v13 = vld [vmem:[#allocation2 + $0x170] sm:$0xff]  ;;  %v683_v16 = vld [vmem:[#allocation2 + $0x220] sm:$0xff] }
 0x447   :  { %v1822_v60 = vpack.c.bf16 %v655_v52, %v648_v49  ;;  %v656_v6 = vld [vmem:[#allocation2 + $0x148] sm:$0xff]  ;;  %v663_v18 = vld [vmem:[#allocation2 + $0x180] sm:$0xff]  ;;  %v670_v19 = vld [vmem:[#allocation2 + $0x1b8] sm:$0xff] }
 0x448   :  { %v668_v4 = vld [vmem:[#allocation2 + $0x1a8] sm:$0xff]  ;;  %v1888_v15 = vpack.c.bf16 %v656_v6, %v649_v5  ;;  %v675_v23 = vld [vmem:[#allocation2 + $0x1e0] sm:$0xff]  ;;  %v682_v24 = vld [vmem:[#allocation2 + $0x218] sm:$0xff] }
 0x449   :  { %1737 = vmatpush1.bf16.msra.mxu1 %v1736_v56  ;;  %1801 = vmatpush1.bf16.msra.mxu0 %v1800_v57  ;;  %v761_v56 = vld [vmem:[#allocation2 + $0x490] sm:$0xff]  ;;  %v768_v57 = vld [vmem:[#allocation2 + $0x4c8] sm:$0xff]  ;;  %v690_v25 = vld [vmem:[#allocation2 + $0x258] sm:$0xff] }
 0x44a   :  { %1739 = vmatprep.subr.bf16.mxu1 %v1738_v58  ;;  %1803 = vmatprep.subr.bf16.mxu0 %v1802_v0  ;;  %v1820_v58 = vpack.c.bf16 %v640_v48, %v633_v47  ;;  %v662_v0 = vld [vmem:[#allocation2 + $0x178] sm:$0xff]  ;;  %v1886_v3 = vpack.c.bf16 %v768_v57, %v761_v56  ;;  %v697_v27 = vld [vmem:[#allocation2 + $0x290] sm:$0xff]  ;;  %v684_v30 = vld [vmem:[#allocation2 + $0x228] sm:$0xff] }
 0x44b   :  { %v1826_v59 = vpack.c.bf16 %v669_v2, %v662_v0  ;;  %v677_v29 = vld [vmem:[#allocation2 + $0x1f0] sm:$0xff]  ;;  %v803_v31 = vld [vmem:[#allocation2 + $0x5e0] sm:$0xff]  ;;  %v696_v36 = vld [vmem:[#allocation2 + $0x288] sm:$0xff] }
 0x44c   :  { %v689_v35 = vld [vmem:[#allocation2 + $0x250] sm:$0xff]  ;;  %v704_v37 = vld [vmem:[#allocation2 + $0x2c8] sm:$0xff]  ;;  %v1896_v38 = vpack.c.bf16 %v684_v30, %v677_v29  ;;  %v691_v41 = vld [vmem:[#allocation2 + $0x260] sm:$0xff] }
 0x44d   :  { %1741 = vmatpush1.bf16.msra.mxu1 %v1740_v7  ;;  %1805 = vmatpush1.bf16.msra.mxu0 %v1804_v9  ;;  %v775_v7 = vld [vmem:[#allocation2 + $0x500] sm:$0xff]  ;;  %v782_v9 = vld [vmem:[#allocation2 + $0x538] sm:$0xff]  ;;  %v817_v43 = vld [vmem:[#allocation2 + $0x650] sm:$0xff] }
 0x44e   :  { %1743 = vmatprep.subr.bf16.mxu1 %v1742_v11  ;;  %1807 = vmatprep.subr.bf16.mxu0 %v1806_v14  ;;  %v1824_v11 = vpack.c.bf16 %v654_v63, %v647_v62  ;;  %v676_v14 = vld [vmem:[#allocation2 + $0x1e8] sm:$0xff]  ;;  %v1890_v17 = vpack.c.bf16 %v782_v9, %v775_v7  ;;  %v698_v42 = vld [vmem:[#allocation2 + $0x298] sm:$0xff]  ;;  %v703_v48 = vld [vmem:[#allocation2 + $0x2c0] sm:$0xff] }
 0x44f   :  { %v710_v49 = vld [vmem:[#allocation2 + $0x2f8] sm:$0xff]  ;;  %v1900_v52 = vpack.c.bf16 %v698_v42, %v691_v41  ;;  %v705_v55 = vld [vmem:[#allocation2 + $0x2d0] sm:$0xff]  ;;  %v712_v56 = vld [vmem:[#allocation2 + $0x308] sm:$0xff] }
 0x450   :  { %v831_v57 = vld [vmem:[#allocation2 + $0x6c0] sm:$0xff]  ;;  %v717_v63 = vld [vmem:[#allocation2 + $0x330] sm:$0xff]  ;;  %v724_v0 = vld [vmem:[#allocation2 + $0x368] sm:$0xff]  ;;  %v1904_v2 = vpack.c.bf16 %v712_v56, %v705_v55 }
 0x451   :  { %1745 = vmatpush1.bf16.msra.mxu1 %v1744_v20  ;;  %1809 = vmatpush1.bf16.msra.mxu0 %v1808_v21  ;;  %v789_v20 = vld [vmem:[#allocation2 + $0x570] sm:$0xff]  ;;  %v796_v21 = vld [vmem:[#allocation2 + $0x5a8] sm:$0xff]  ;;  %v719_v6 = vld [vmem:[#allocation2 + $0x340] sm:$0xff]  ;;  %v1844_v9 = vpack.c.bf16 %v724_v0, %v717_v63 }
 0x452   :  { %1747 = vmatprep.subr.bf16.mxu1 %v1746_v22  ;;  %1811 = vmatprep.subr.bf16.mxu0 %v1810_v26  ;;  %v1828_v22 = vpack.c.bf16 %v668_v4, %v661_v13  ;;  %v1892_v26 = vpack.c.bf16 %v670_v19, %v663_v18  ;;  %v1894_v28 = vpack.c.bf16 %v796_v21, %v789_v20  ;;  %v726_v7 = vld [vmem:[#allocation2 + $0x378] sm:$0xff]  ;;  %v745_v18 = vld [vmem:[#allocation2 + $0x410] sm:$0xff]  ;;  %v752_v19 = vld [vmem:[#allocation2 + $0x448] sm:$0xff] }
 0x453   :  { %v738_v13 = vld [vmem:[#allocation2 + $0x3d8] sm:$0xff]  ;;  %v1908_v4 = vpack.c.bf16 %v726_v7, %v719_v6  ;;  %v760_v20 = vld [vmem:[#allocation2 + $0x488] sm:$0xff]  ;;  %v767_v21 = vld [vmem:[#allocation2 + $0x4c0] sm:$0xff] }
 0x454   :  { %v773_v29 = vld [vmem:[#allocation2 + $0x4f0] sm:$0xff]  ;;  %v780_v30 = vld [vmem:[#allocation2 + $0x528] sm:$0xff] }
 0x455   :  { %1749 = vmatpush1.bf16.msra.mxu1 %v1748_v32  ;;  %1813 = vmatpush1.bf16.msra.mxu0 %v1812_v33  ;;  %v810_v32 = vld [vmem:[#allocation2 + $0x618] sm:$0xff]  ;;  %v1832_v33 = vpack.c.bf16 %v682_v24, %v675_v23  ;;  %v759_v23 = vld [vmem:[#allocation2 + $0x480] sm:$0xff]  ;;  %v801_v41 = vld [vmem:[#allocation2 + $0x5d0] sm:$0xff] }
 0x456   :  { %1815 = vmatprep.subr.bf16.mxu1 %v1814_v34  ;;  %1879 = vmatprep.subr.bf16.mxu0 %v1878_v39  ;;  %v1834_v34 = vpack.c.bf16 %v697_v27, %v690_v25  ;;  %v711_v39 = vld [vmem:[#allocation2 + $0x300] sm:$0xff]  ;;  %v1898_v40 = vpack.c.bf16 %v810_v32, %v803_v31  ;;  %v766_v24 = vld [vmem:[#allocation2 + $0x4b8] sm:$0xff]  ;;  %v788_v31 = vld [vmem:[#allocation2 + $0x568] sm:$0xff] }
 0x457   :  { %v1838_v47 = vpack.c.bf16 %v711_v39, %v704_v37  ;;  %v774_v25 = vld [vmem:[#allocation2 + $0x4f8] sm:$0xff]  ;;  %v1856_v27 = vpack.c.bf16 %v766_v24, %v759_v23  ;;  %v795_v32 = vld [vmem:[#allocation2 + $0x5a0] sm:$0xff]  ;;  %v808_v42 = vld [vmem:[#allocation2 + $0x608] sm:$0xff] }
 0x458   :  { %904 = vmatmul.mubr.f32.vlgmr.msra.gmra.mrb[2].mxu1 %v2259_v12  ;;  %975 = vmatmul.mubr.f32.vlgmr.msra.gmra.mrb[4].mxu0 %v2259_v12  ;;  %v802_v37 = vld [vmem:[#allocation2 + $0x5d8] sm:$0xff]  ;;  %v829_v55 = vld [vmem:[#allocation2 + $0x6b0] sm:$0xff]  ;;  %v836_v56 = vld [vmem:[#allocation2 + $0x6e8] sm:$0xff] }
 0x459   :  { %1817 = vmatpush1.bf16.msra.mxu1 %v1816_v44  ;;  %1881 = vmatpush3.bf16.msra.mxu0 %v1880_v50  ;;  %v824_v44 = vld [vmem:[#allocation2 + $0x688] sm:$0xff]  ;;  %v718_v50 = vld [vmem:[#allocation2 + $0x338] sm:$0xff] }
 0x45a   :  { %1819 = vmatprep.subr.bf16.mxu1 %v1818_v46  ;;  %1883 = vmatprep.subr.bf16.mxu0 %v1882_v53  ;;  %v1836_v46 = vpack.c.bf16 %v696_v36, %v689_v35  ;;  %v725_v53 = vld [vmem:[#allocation2 + $0x370] sm:$0xff]  ;;  %v1902_v54 = vpack.c.bf16 %v824_v44, %v817_v43  ;;  %v787_v35 = vld [vmem:[#allocation2 + $0x560] sm:$0xff]  ;;  %v794_v36 = vld [vmem:[#allocation2 + $0x598] sm:$0xff] }
 0x45b   :  { %1116 = vmatprep.mubr.f32.mxu0 %v2261_v61  ;;  %1045 = vmatprep.mubr.f32.mxu1 %v2261_v61  ;;  %v1830_v61 = vpack.c.bf16 %v683_v16, %v676_v14  ;;  %v1842_v62 = vpack.c.bf16 %v725_v53, %v718_v50  ;;  %v746_v14 = vld [vmem:[#allocation2 + $0x418] sm:$0xff]  ;;  %v1864_v39 = vpack.c.bf16 %v794_v36, %v787_v35  ;;  %v816_v43 = vld [vmem:[#allocation2 + $0x648] sm:$0xff]  ;;  %v823_v44 = vld [vmem:[#allocation2 + $0x680] sm:$0xff] }
 0x45c   :  { %v830_v50 = vld [vmem:[#allocation2 + $0x6b8] sm:$0xff] }
 0x45d   :  { %1821 = vmatpush1.bf16.msra.mxu1 %v1820_v58  ;;  %1885 = vmatpush3.bf16.msra.mxu0 %v1884_v1  ;;  %v838_v58 = vld [vmem:[#allocation2 + $0x6f8] sm:$0xff]  ;;  %v732_v1 = vld [vmem:[#allocation2 + $0x3a8] sm:$0xff] }
 0x45e   :  { %1823 = vmatprep.subr.bf16.mxu1 %v1822_v60  ;;  %1887 = vmatprep.subr.bf16.mxu0 %v1886_v3  ;;  %v1840_v60 = vpack.c.bf16 %v710_v49, %v703_v48  ;;  %v739_v3 = vld [vmem:[#allocation2 + $0x3e0] sm:$0xff]  ;;  %v1906_v5 = vpack.c.bf16 %v838_v58, %v831_v57  ;;  %v822_v49 = vld [vmem:[#allocation2 + $0x678] sm:$0xff]  ;;  %v1876_v57 = vpack.c.bf16 %v836_v56, %v829_v55 }
 0x45f   :  { %v815_v48 = vld [vmem:[#allocation2 + $0x640] sm:$0xff] }
 0x460   :  { %v1872_v53 = vpack.c.bf16 %v822_v49, %v815_v48 }
 0x461   :  { %1825 = vmatpush1.bf16.msra.mxu1 %v1824_v11  ;;  %1889 = vmatpush3.bf16.msra.mxu0 %v1888_v15  ;;  %v1846_v11 = vpack.c.bf16 %v739_v3, %v732_v1  ;;  %v753_v15 = vld [vmem:[#allocation2 + $0x450] sm:$0xff] }
 0x462   :  { %1827 = vmatprep.subr.bf16.mxu1 %v1826_v59  ;;  %1891 = vmatprep.subr.bf16.mxu0 %v1890_v17  ;;  %v731_v59 = vld [vmem:[#allocation2 + $0x3a0] sm:$0xff]  ;;  %v1850_v17 = vpack.c.bf16 %v753_v15, %v746_v14 }
 0x463   :  { %v1848_v16 = vpack.c.bf16 %v738_v13, %v731_v59 }
 0x465   :  { %1829 = vmatpush1.bf16.msra.mxu1 %v1828_v22  ;;  %1893 = vmatpush3.bf16.msra.mxu0 %v1892_v26  ;;  %v1852_v22 = vpack.c.bf16 %v752_v19, %v745_v18  ;;  %v781_v26 = vld [vmem:[#allocation2 + $0x530] sm:$0xff] }
 0x466   :  { %1831 = vmatprep.subr.bf16.mxu1 %v1830_v61  ;;  %1895 = vmatprep.subr.bf16.mxu0 %v1894_v28  ;;  %v1854_v61 = vpack.c.bf16 %v767_v21, %v760_v20  ;;  %v1858_v28 = vpack.c.bf16 %v781_v26, %v774_v25 }
 0x469   :  { %1833 = vmatpush1.bf16.msra.mxu1 %v1832_v33  ;;  %1897 = vmatpush3.bf16.msra.mxu0 %v1896_v38  ;;  %v1860_v33 = vpack.c.bf16 %v780_v30, %v773_v29  ;;  %v809_v38 = vld [vmem:[#allocation2 + $0x610] sm:$0xff] }
 0x46a   :  { %1835 = vmatprep.subr.bf16.mxu1 %v1834_v34  ;;  %1899 = vmatprep.subr.bf16.mxu0 %v1898_v40  ;;  %v1862_v34 = vpack.c.bf16 %v795_v32, %v788_v31  ;;  %v1866_v40 = vpack.c.bf16 %v809_v38, %v802_v37 }
 0x46d   :  { %1837 = vmatpush1.bf16.msra.mxu1 %v1836_v46  ;;  %1901 = vmatpush3.bf16.msra.mxu0 %v1900_v52  ;;  %v1868_v46 = vpack.c.bf16 %v808_v42, %v801_v41  ;;  %v837_v52 = vld [vmem:[#allocation2 + $0x6f0] sm:$0xff] }
 0x46e   :  { %1839 = vmatprep.subr.bf16.mxu1 %v1838_v47  ;;  %1903 = vmatprep.subr.bf16.mxu0 %v1902_v54  ;;  %v1870_v47 = vpack.c.bf16 %v823_v44, %v816_v43  ;;  %v1874_v54 = vpack.c.bf16 %v837_v52, %v830_v50 }
 0x471   :  { %1841 = vmatpush1.bf16.msra.mxu1 %v1840_v60  ;;  %1905 = vmatpush3.bf16.msra.mxu0 %v1904_v2 }
 0x472   :  { %1843 = vmatprep.subr.bf16.mxu1 %v1842_v62  ;;  %1907 = vmatprep.subr.bf16.mxu0 %v1906_v5 }
 0x475   :  { %1845 = vmatpush1.bf16.msra.mxu1 %v1844_v9  ;;  %1909 = vmatpush3.bf16.msra.mxu0 %v1908_v4 }
 0x476   :  { %1847 = vmatprep.subr.bf16.mxu1 %v1846_v11 }
 0x478   :  { %1117 = vmatmul.mubr.f32.vlgmr.msra.gmra.mrb[6].mxu0 %v2259_v12 }
 0x479   :  { %1849 = vmatpush1.bf16.msra.mxu1 %v1848_v16 }
 0x47a   :  { %1851 = vmatprep.subr.bf16.mxu1 %v1850_v17 }
 0x47d   :  { %1853 = vmatpush1.bf16.msra.mxu1 %v1852_v22 }
 0x47e   :  { %1855 = vmatprep.subr.bf16.mxu1 %v1854_v61 }
 0x481   :  { %1857 = vmatpush1.bf16.msra.mxu1 %v1856_v27 }
 0x482   :  { %1859 = vmatprep.subr.bf16.mxu1 %v1858_v28 }
 0x485   :  { %1861 = vmatpush1.bf16.msra.mxu1 %v1860_v33 }
 0x486   :  { %1863 = vmatprep.subr.bf16.mxu1 %v1862_v34 }
 0x489   :  { %1865 = vmatpush1.bf16.msra.mxu1 %v1864_v39 }
 0x48a   :  { %1867 = vmatprep.subr.bf16.mxu1 %v1866_v40 }
 0x48d   :  { %1869 = vmatpush1.bf16.msra.mxu1 %v1868_v46 }
 0x48e   :  { %1871 = vmatprep.subr.bf16.mxu1 %v1870_v47 }
 0x491   :  { %1873 = vmatpush1.bf16.msra.mxu1 %v1872_v53 }
 0x492   :  { %1875 = vmatprep.subr.bf16.mxu1 %v1874_v54 }
 0x495   :  { %1877 = vmatpush1.bf16.msra.mxu1 %v1876_v57 }
 0x498   :  { %1046 = vmatmul.mubr.f32.vlgmr.msra.gmra.mrb[4].mxu1 %v2259_v12 }
 0x52b   :  { %v2271_v58 = vpop.f32.mrb[2].mxu1  ;;  %v2275_v62 = vpop.f32.mrb[4].mxu0 }
 0x52c   :  { %v1129_v60 = vrot.slane %v2271_v58, %v2175_v10  ;;  %v2277_v63 = vpop.f32.mrb[3].mxu1  ;;  %v1137_v0 = vrot.slane %v2275_v62, %v2175_v10  ;;  %v2283_v2 = vpop.f32.mrb[5].mxu0 }
 0x52d   :  { %v1133_v1 = vrot.slane %v2277_v63, %v2175_v10  ;;  %v1141_v12 = vrot.slane %v2283_v2, %v2175_v10 }
 0x52e   :  { %v1154_v3 = vsub.f32 %v2271_v58, %v1129_v60  ;;  %v1156_v5 = vsub.f32 %v2275_v62, %v1137_v0 }
 0x52f   :  { %v1155_v6 = vsub.f32 %v2277_v63, %v1133_v1  ;;  %v1157_v11 = vsub.f32 %v2283_v2, %v1141_v12 }
 0x530   :  { %v1161_v7 = vrot.slane %v1154_v3, 4  ;;  %v1203_v9 = vmul.f32 %v1154_v3, %v1154_v3  ;;  %v1173_v59 = vrot.slane %v1156_v5, 4  ;;  %v1205_v13 = vmul.f32 %v1156_v5, %v1156_v5 }
 0x531   :  { %v1167_v4 = vrot.slane %v1155_v6, 4  ;;  %v1204_v14 = vmul.f32 %v1155_v6, %v1155_v6  ;;  %v1179_v17 = vrot.slane %v1157_v11, 4  ;;  %v1206_v18 = vmul.f32 %v1157_v11, %v1157_v11 }
 0x532   :  { %v1162_v15 = vadd.f32 %v1161_v7, %v1154_v3  ;;  %v1210_v16 = vrot.slane %v1203_v9, 4  ;;  %v1174_v19 = vadd.f32 %v1173_v59, %v1156_v5  ;;  %v1222_v20 = vrot.slane %v1205_v13, 4 }
 0x533   :  { %v1168_v21 = vadd.f32 %v1167_v4, %v1155_v6  ;;  %v1216_v22 = vrot.slane %v1204_v14, 4  ;;  %v1180_v24 = vadd.f32 %v1179_v17, %v1157_v11  ;;  %v1228_v25 = vrot.slane %v1206_v18, 4 }
 0x534   :  { %v1163_v61 = vrot.slane %v1162_v15, 2  ;;  %v1211_v23 = vadd.f32 %v1210_v16, %v1203_v9  ;;  %v1175_v26 = vrot.slane %v1174_v19, 2  ;;  %v1223_v27 = vadd.f32 %v1222_v20, %v1205_v13 }
 0x535   :  { %v1169_v28 = vrot.slane %v1168_v21, 2  ;;  %v1217_v29 = vadd.f32 %v1216_v22, %v1204_v14  ;;  %v1181_v32 = vrot.slane %v1180_v24, 2  ;;  %v1229_v33 = vadd.f32 %v1228_v25, %v1206_v18 }
 0x536   :  { %v1164_v30 = vadd.f32 %v1163_v61, %v1162_v15  ;;  %v1212_v31 = vrot.slane %v1211_v23, 2  ;;  %v1176_v34 = vadd.f32 %v1175_v26, %v1174_v19  ;;  %v1224_v35 = vrot.slane %v1223_v27, 2 }
 0x537   :  { %v1170_v36 = vadd.f32 %v1169_v28, %v1168_v21  ;;  %v1218_v37 = vrot.slane %v1217_v29, 2  ;;  %v1182_v40 = vadd.f32 %v1181_v32, %v1180_v24  ;;  %v1230_v41 = vrot.slane %v1229_v33, 2 }
 0x538   :  { %v1165_v38 = vrot.slane %v1164_v30, 1  ;;  %v1213_v39 = vadd.f32 %v1212_v31, %v1211_v23  ;;  %v1177_v42 = vrot.slane %v1176_v34, 1  ;;  %v1225_v43 = vadd.f32 %v1224_v35, %v1223_v27 }
 0x539   :  { %v1171_v44 = vrot.slane %v1170_v36, 1  ;;  %v1219_v46 = vadd.f32 %v1218_v37, %v1217_v29  ;;  %v1183_v49 = vrot.slane %v1182_v40, 1  ;;  %v1231_v50 = vadd.f32 %v1230_v41, %v1229_v33 }
 0x53a   :  { %v1166_v47 = vadd.f32 %v1165_v38, %v1164_v30  ;;  %v1214_v48 = vrot.slane %v1213_v39, 1  ;;  %v1178_v52 = vadd.f32 %v1177_v42, %v1176_v34  ;;  %v1226_v53 = vrot.slane %v1225_v43, 1 }
 0x53b   :  { %v1172_v54 = vadd.f32 %v1171_v44, %v1170_v36  ;;  %v1220_v55 = vrot.slane %v1219_v46, 1  ;;  %v1184_v60 = vadd.f32 %v1183_v49, %v1182_v40  ;;  %v1232_v0 = vrot.slane %v1231_v50, 1 }
 0x53c   :  { %v1215_v56 = vadd.f32 %v1214_v48, %v1213_v39  ;;  %v2291_v57 = vmul.f32 0.125, %v1166_v47  ;;  %v1227_v1 = vadd.f32 %v1226_v53, %v1225_v43  ;;  %v2293_v3 = vmul.f32 0.125, %v1178_v52 }
 0x53d   :  { %v1221_v12 = vadd.f32 %v1220_v55, %v1219_v46  ;;  %v2295_v5 = vmul.f32 0.125, %v1172_v54  ;;  %v1233_v9 = vadd.f32 %v1232_v0, %v1231_v50  ;;  %v2303_v15 = vmul.f32 0.125, %v1184_v60 }
 0x53e   :  { %v1259_v6 = vmul.f32 0.125, %v1215_v56  ;;  %v1266_v7 = vmul.f32 %v2291_v57, %v2291_v57  ;;  %v1261_v11 = vmul.f32 0.125, %v1227_v1  ;;  %v1268_v59 = vmul.f32 %v2293_v3, %v2293_v3 }
 0x53f   :  { %v1260_v13 = vmul.f32 0.125, %v1221_v12  ;;  %v1267_v14 = vmul.f32 %v2295_v5, %v2295_v5  ;;  %v1262_v17 = vmul.f32 0.125, %v1233_v9  ;;  %v1269_v20 = vmul.f32 %v2303_v15, %v2303_v15 }
 0x540   :  { %v1273_v4 = vsub.f32 %v1259_v6, %v1266_v7  ;;  %v1275_v16 = vsub.f32 %v1261_v11, %v1268_v59 }
 0x541   :  { %v1274_v19 = vsub.f32 %v1260_v13, %v1267_v14  ;;  %v1276_v23 = vsub.f32 %v1262_v17, %v1269_v20 }
 0x542   :  { %v1280_v18 = vmax.f32 %v1273_v4, 0.0  ;;  %v1282_v21 = vmax.f32 %v1275_v16, 0.0 }
 0x543   :  { %v1281_v61 = vmax.f32 %v1274_v19, 0.0  ;;  %v1283_v26 = vmax.f32 %v1276_v23, 0.0 }
 0x544   :  { %v1294_v22 = vadd.f32 1e-05, %v1280_v18  ;;  %v1296_v24 = vadd.f32 1e-05, %v1282_v21 }
 0x545   :  { %v1295_v25 = vadd.f32 1e-05, %v1281_v61  ;;  %v1297_v27 = vadd.f32 1e-05, %v1283_v26 }
 0x546   :  { %1935 = vrsqrt.f32 %v1294_v22 }
 0x547   :  { %1937 = vrsqrt.f32 %v1296_v24 }
 0x548   :  { %1939 = vrsqrt.f32 %v1295_v25 }
 0x549   :  { %1941 = vrsqrt.f32 %v1297_v27 }
 0x54b   :  { %v1610_v28 = vpop.f32.mrb[6].mxu0 }
 0x54c   :  { %v1611_v29 = vpop.f32.mrb[7].mxu0 }
 0x54d   :  { %v2307_v30 = vadd.f32 %v1611_v29, %v1610_v28 }
 0x54f   :  { %v1153_v35 = vrot.slane %v2307_v30, %v2175_v10 }
 0x550   :  { %v1936_v31 = vpop.eup %1935 }
 0x551   :  { %v1938_v32 = vpop.eup %1937  ;;  %v1160_v40 = vsub.f32 %v2307_v30, %v1153_v35 }
 0x552   :  { %v1940_v33 = vpop.eup %1939 }
 0x553   :  { %v1315_v34 = vcombine.low %v1936_v31, %v1940_v33  ;;  %v1942_v36 = vpop.eup %1941  ;;  %v1209_v42 = vmul.f32 %v1160_v40, %v1160_v40  ;;  %v1197_v43 = vrot.slane %v1160_v40, 4 }
 0x554   :  { %v1316_v38 = vcombine.low %v1938_v32, %v1942_v36 }
 0x555   :  { %v2312_v37 = vrot.slane %v1315_v34, %v2236_v45  ;;  %v1246_v44 = vrot.slane %v1209_v42, 4  ;;  %v1198_v46 = vadd.f32 %v1197_v43, %v1160_v40 }
 0x556   :  { %v2315_v39 = vrot.slane %v1316_v38, %v2236_v45 }
 0x557   :  { %v1247_v47 = vadd.f32 %v1246_v44, %v1209_v42  ;;  %v1199_v48 = vrot.slane %v1198_v46, 2 }
 0x558   :  { %v1346_v41 = vcombine.low %v2312_v37, %v2315_v39  ;;  %v1287_v37 = vadd.f32 %v2291_v57, %v2271_v58  ;;  %v1289_v39 = vadd.f32 %v2293_v3, %v2275_v62 }
 0x559   :  { %v1248_v49 = vrot.slane %v1247_v47, 2  ;;  %v1200_v50 = vadd.f32 %v1199_v48, %v1198_v46 }
 0x55b   :  { %v1249_v52 = vadd.f32 %v1248_v49, %v1247_v47  ;;  %v1201_v53 = vrot.slane %v1200_v50, 1 }
 0x55d   :  { %v1250_v60 = vrot.slane %v1249_v52, 1  ;;  %v1202_v12 = vadd.f32 %v1201_v53, %v1200_v50 }
 0x55f   :  { %v1251_v11 = vadd.f32 %v1250_v60, %v1249_v52  ;;  %v1258_v16 = vmul.f32 0.125, %v1202_v12 }
 0x561   :  { %v1265_v21 = vmul.f32 0.125, %v1251_v11  ;;  %v1272_v22 = vmul.f32 %v1258_v16, %v1258_v16 }
 0x563   :  { %v1279_v31 = vsub.f32 %v1265_v21, %v1272_v22  ;;  %v1380_v21 = vsub.s32 3, %v2169_v8  ;;  %v1384_v22 = vsub.s32 4, %v2169_v8 }
 0x565   :  { %v1286_v43 = vmax.f32 %v1279_v31, 0.0 }
 0x567   :  { %v1300_v53 = vadd.f32 1e-05, %v1286_v43 }
 0x569   :  { %1943 = vrsqrt.f32 %v1300_v53 }
 0x56b   :  { %v2320_v54 = vpop.f32.mrb[4].mxu1 }
 0x56c   :  { %v1145_v55 = vrot.slane %v2320_v54, %v2175_v10  ;;  %v2324_v56 = vpop.f32.mrb[5].mxu1 }
 0x56d   :  { %v1149_v0 = vrot.slane %v2324_v56, %v2175_v10 }
 0x56e   :  { %v1158_v1 = vsub.f32 %v2320_v54, %v1145_v55 }
 0x56f   :  { %v1159_v6 = vsub.f32 %v2324_v56, %v1149_v0 }
 0x570   :  { %v1185_v7 = vrot.slane %v1158_v1, 4  ;;  %v1207_v9 = vmul.f32 %v1158_v1, %v1158_v1 }
 0x571   :  { %v1191_v59 = vrot.slane %v1159_v6, 4  ;;  %v1208_v13 = vmul.f32 %v1159_v6, %v1159_v6 }
 0x572   :  { %v1186_v4 = vadd.f32 %v1185_v7, %v1158_v1  ;;  %v1234_v14 = vrot.slane %v1207_v9, 4 }
 0x573   :  { %v1192_v17 = vadd.f32 %v1191_v59, %v1159_v6  ;;  %v1240_v18 = vrot.slane %v1208_v13, 4  ;;  %v1944_v6 = vpop.eup %1943 }
 0x574   :  { %v1187_v19 = vrot.slane %v1186_v4, 2  ;;  %v1235_v20 = vadd.f32 %v1234_v14, %v1207_v9  ;;  %v1345_v59 = vrot.slane %v1944_v6, %v2236_v45  ;;  %v1354_v14 = vrot.slane %v1346_v41, %v2236_v45 }
 0x575   :  { %v1193_v61 = vrot.slane %v1192_v17, 2  ;;  %v1241_v23 = vadd.f32 %v1240_v18, %v1208_v13  ;;  %v1563_v18 = vld [vmem:[%s2394_s6 + $0xa] ss:$2 sm:$0xff] }
 0x576   :  { %v1188_v24 = vadd.f32 %v1187_v19, %v1186_v4  ;;  %v1236_v25 = vrot.slane %v1235_v20, 2 }
 0x577   :  { %v1194_v26 = vadd.f32 %v1193_v61, %v1192_v17  ;;  %v1242_v27 = vrot.slane %v1241_v23, 2  ;;  %v1388_v61 = vsub.s32 5, %v2169_v8 }
 0x578   :  { %v1189_v28 = vrot.slane %v1188_v24, 1  ;;  %v1237_v29 = vadd.f32 %v1236_v25, %v1235_v20  ;;  %v1376_v20 = vsub.s32 2, %v2169_v8  ;;  %v1290_v25 = vadd.f32 %v2303_v15, %v2283_v2 }
 0x579   :  { %v1195_v32 = vrot.slane %v1194_v26, 1  ;;  %v1243_v33 = vadd.f32 %v1242_v27, %v1241_v23  ;;  %v1392_v23 = vsub.s32 6, %v2169_v8 }
 0x57a   :  { %v1190_v34 = vadd.f32 %v1189_v28, %v1188_v24  ;;  %v1238_v35 = vrot.slane %v1237_v29, 1  ;;  %v1288_v24 = vadd.f32 %v2295_v5, %v2277_v63 }
 0x57b   :  { %v1196_v36 = vadd.f32 %v1195_v32, %v1194_v26  ;;  %v1244_v38 = vrot.slane %v1243_v33, 1  ;;  %v1293_v26 = vadd.f32 %v2307_v30, %v1258_v16 }
 0x57c   :  { %v1239_v40 = vadd.f32 %v1238_v35, %v1237_v29  ;;  %v1256_v42 = vmul.f32 0.125, %v1190_v34 }
 0x57d   :  { %v1245_v44 = vadd.f32 %v1244_v38, %v1243_v33  ;;  %v1257_v46 = vmul.f32 0.125, %v1196_v36 }
 0x57e   :  { %v1263_v47 = vmul.f32 0.125, %v1239_v40  ;;  %v1270_v48 = vmul.f32 %v1256_v42, %v1256_v42  ;;  %v1291_v27 = vadd.f32 %v1256_v42, %v2320_v54 }
 0x57f   :  { %v1264_v49 = vmul.f32 0.125, %v1245_v44  ;;  %v1271_v50 = vmul.f32 %v1257_v46, %v1257_v46  ;;  %v1292_v31 = vadd.f32 %v1257_v46, %v2324_v56 }
 0x580   :  { %v1277_v52 = vsub.f32 %v1263_v47, %v1270_v48 }
 0x581   :  { %v1278_v55 = vsub.f32 %v1264_v49, %v1271_v50 }
 0x582   :  { %v1284_v60 = vmax.f32 %v1277_v52, 0.0 }
 0x583   :  { %v1285_v0 = vmax.f32 %v1278_v55, 0.0 }
 0x584   :  { %v1298_v1 = vadd.f32 1e-05, %v1284_v60 }
 0x585   :  { %v1299_v12 = vadd.f32 1e-05, %v1285_v0 }
 0x586   :  { %1945 = vrsqrt.f32 %v1298_v1 }
 0x587   :  { %1947 = vrsqrt.f32 %v1299_v12 }
 0x590   :  { %v1946_v7 = vpop.eup %1945 }
 0x591   :  { %v1948_v9 = vpop.eup %1947 }
 0x592   :  { %v1317_v11 = vcombine.low %v1946_v7, %v1948_v9 }
 0x594   :  { %v1338_v13 = vrot.slane %v1317_v11, %v2236_v45 }
 0x596   :  { %v1347_v4 = vcombine.low %v1338_v13, %v1345_v59 }
 0x598   :  { %v1361_v17 = vrot.slane %v1347_v4, %v2236_v45 }
 0x59a   :  { %v1362_v19 = vcombine.low %v1354_v14, %v1361_v17 }
 0x59c   :  { %v1364_v41 = vmul.f32 %v1563_v18, %v1362_v19 }
 0x59e   :  { %v1369_v28 = vrot.slane %v1364_v41, %v2175_v10  ;;  %v1373_v8 = vrot.slane %v1364_v41, %v2244_v51  ;;  %v1377_v29 = vrot.slane %v1364_v41, %v1376_v20  ;;  %v1381_v57 = vrot.slane %v1364_v41, %v1380_v21 }
 0x59f   :  { %v1385_v3 = vrot.slane %v1364_v41, %v1384_v22  ;;  %v1389_v32 = vrot.slane %v1364_v41, %v1388_v61  ;;  %v1393_v33 = vrot.slane %v1364_v41, %v1392_v23 }
 0x5a0   :  { %v1401_v34 = vmul.f32 %v1369_v28, %v1287_v37  ;;  %v1402_v5 = vmul.f32 %v1373_v8, %v1288_v24  ;;  %v1403_v35 = vmul.f32 %v1377_v29, %v1289_v39  ;;  %v1404_v36 = vmul.f32 %v1381_v57, %v1290_v25 }
 0x5a1   :  { %v1405_v15 = vmul.f32 %v1385_v3, %v1291_v27  ;;  %v1406_v38 = vmul.f32 %v1389_v32, %v1292_v31  ;;  %v1407_v16 = vmul.f32 %v1393_v33, %v1293_v26  ;;  %v1465_v40 = vmul.f32 %v1369_v28, %v2271_v58 }
 0x5a2   :  { %v1415_v42 = vcombine.low %v1401_v34, %v1402_v5  ;;  %v1416_v43 = vcombine.low %v1403_v35, %v1404_v36  ;;  %v1466_v44 = vmul.f32 %v1373_v8, %v2277_v63  ;;  %v1467_v47 = vmul.f32 %v1377_v29, %v2275_v62 }
 0x5a3   :  { %v1417_v48 = vcombine.low %v1405_v15, %v1406_v38  ;;  %v1468_v46 = vmul.f32 %v1381_v57, %v2283_v2  ;;  %v1469_v49 = vmul.f32 %v1385_v3, %v2320_v54  ;;  %v1470_v53 = vmul.f32 %v1389_v32, %v2324_v56  ;;  %v1564_v54 = vld [vmem:[%s2394_s6 + $0xb] ss:$2 sm:$0xff]  ;;  %s1542_s6 = sshll.u32 %s2080_s20, 4  ;;  %s1543_s6 = int_to_ptr.vmem [resolvable:$true] %s1542_s6 }
 0x5a4   :  { %v1424_v50 = vrot.slane %v1415_v42, %v2236_v45  ;;  %v1431_v52 = vrot.slane %v1416_v43, %v2236_v45  ;;  %v1471_v55 = vmul.f32 %v2307_v30, %v1393_v33  ;;  %v1445_v60 = vrot.slane %v1407_v16, %v2236_v45  ;;  %s2037_s21 = scalar_lea.vmem %s1543_s6, 896  ;;  %p2042_p5 = scmp.lt.s32.totalorder %s1543_s6, %s1543_s6 }
 0x5a5   :  { %v1438_v58 = vrot.slane %v1417_v48, %v2236_v45  ;;  %p2038_p4 = scmp.ne.s32.totalorder %s1543_s6, %s2037_s21  ;;  %p2043_p6 = scmp.lt.s32.totalorder %s2037_s21, %s2037_s21 }
 0x5a6   :  { %v1446_v63 = vcombine.low %v1424_v50, %v1431_v52 }
 0x5a7   :  { %v1447_v0 = vcombine.low %v1438_v58, %v1445_v60  ;;  %p2044_p7 = por %p2043_p6, %p2042_p5 }
 0x5a8   :  { %v1454_v62 = vrot.slane %v1446_v63, %v2236_v45 }
 0x5a9   :  { %v1461_v2 = vrot.slane %v1447_v0, %v2236_v45  ;;  %p2045_p8 = pnand %p2044_p7, %p2038_p4 }
 0x5ab   :  { %v1462_v1 = vcombine.low %v1454_v62, %v1461_v2 }
 0x5ad   :  { %v1464_v12 = vsub.f32 %v1564_v54, %v1462_v1 }
 0x5af   :  { %v1484_v6 = vrot.slane %v1464_v12, %v1376_v20  ;;  %v1488_v56 = vrot.slane %v1464_v12, %v1380_v21  ;;  %v1492_v7 = vrot.slane %v1464_v12, %v1384_v22  ;;  %v1496_v30 = vrot.slane %v1464_v12, %v1388_v61 }
 0x5b0   :  { %v1500_v9 = vrot.slane %v1464_v12, %v1392_v23  ;;  %v1476_v11 = vrot.slane %v1464_v12, %v2175_v10  ;;  %v1480_v59 = vrot.slane %v1464_v12, %v2244_v51 }
 0x5b1   :  { %v1512_v13 = vadd.f32 %v1492_v7, %v1469_v49  ;;  %v1513_v4 = vadd.f32 %v1496_v30, %v1470_v53  ;;  %v1510_v14 = vadd.f32 %v1484_v6, %v1467_v47  ;;  %v1511_v17 = vadd.f32 %v1488_v56, %v1468_v46 }
 0x5b2   :  { %v1514_v45 = vadd.f32 %v1500_v9, %v1471_v55  ;;  %v1508_v18 = vadd.f32 %v1476_v11, %v1465_v40  ;;  %v1509_v19 = vadd.f32 %v1480_v59, %v1466_v44 }
 0x5b3   :  { %v1519_v37 = vmul.f32 0.01, %v1512_v13  ;;  %v1520_v39 = vmul.f32 0.01, %v1513_v4  ;;  %v1517_v20 = vmul.f32 0.01, %v1510_v14 }
 0x5b4   :  { %v1521_v21 = vmul.f32 0.01, %v1514_v45  ;;  %v1515_v22 = vmul.f32 0.01, %v1508_v18  ;;  %v1516_v61 = vmul.f32 0.01, %v1509_v19 }
 0x5b5   :  { %v1526_v23 = vmax.f32 %v1512_v13, %v1519_v37  ;;  %v1527_v41 = vmax.f32 %v1513_v4, %v1520_v39  ;;  %v1518_v10 = vmul.f32 0.01, %v1511_v17  ;;  %v1524_v24 = vmax.f32 %v1510_v14, %v1517_v20 }
 0x5b6   :  { %v1528_v51 = vmax.f32 %v1514_v45, %v1521_v21  ;;  %v1522_v25 = vmax.f32 %v1508_v18, %v1515_v22  ;;  %v1523_v26 = vmax.f32 %v1509_v19, %v1516_v61 }
 0x5b7   :  { %1533 = vst [vmem:[#allocation10 + $0x20] sm:$0xff] %v1526_v23  ;;  %1534 = vst [vmem:[#allocation10 + $0x28] sm:$0xff] %v1527_v41  ;;  %v1525_v27 = vmax.f32 %v1511_v17, %v1518_v10 }
 0x5b8   :  { %1531 = vst [vmem:[#allocation10 + $0x10] sm:$0xff] %v1524_v24  ;;  %1535 = vst [vmem:[#allocation10 + $0x30] sm:$0xff] %v1528_v51 }
 0x5b9   :  { %1529 = vst [vmem:[#allocation10] sm:$0xff] %v1522_v25  ;;  %1530 = vst [vmem:[#allocation10 + $0x8] sm:$0xff] %v1523_v26 }
 0x5ba   :  { %1532 = vst [vmem:[#allocation10 + $0x18] sm:$0xff] %v1525_v27 }
 0x5bb   :  { %2048 = shalt.err (!%p2045_p8)
}
 0x5bc   :  { %s2049_s24 = scalar_lea.hbm %s2395_s7, 896 }
 0x5bd   :  { %p2050_p9 = scmp.ne.s32.totalorder %s2395_s7, %s2049_s24  ;;  %p2053_p10 = scmp.lt.u32.totalorder %s2049_s24, %s2395_s7 }
 0x5bf   :  { %p2055_p11 = pnand %p2053_p10, %p2050_p9 }
 0x5c1   :  { %2058 = shalt.err (!%p2055_p11)
}
 0x5c2   :  { %1545 = dma.vmem_to_hbm [thread:$0]  %s1543_s6, 896, %s2395_s7, [#allocation6]  }
 0x5c3   :  { %2065 = dma.done.wait [#allocation6], 896  }
 0x5c4   :  { %2066 = vsyncadd [#allocation6], 4294966400 }
 0x5c5   :  { %1549 = vsyncpa [#allocation5], 1 }
 0x5c6   :  { %1550 = vsyncpa [#allocation8], 1 }
 0x5c7   :  { %1551 = vsyncpa [#allocation6], 1 }
 0x5c8   :  { %1552 = vsyncmov [#allocation3] }
 0x5cb   :  { %s1553_s8 = vpop.sfrf %1552 }
 0x5cc   :  { %p1565_p12 = scmp.ne.s32.totalorder %s1553_s8, 0 }
 0x5ce   :  { %1557 = shalt.err (%p1565_p12)  }

</bundles_post_ra>
